<compile_context>
chip_gen: v6e
topology: v6e:2x2x1
jax: 0.10.0
libtpu: 0.0.40
codegen_flags: <defaults>
</compile_context>

<pallas_src>
import functools
import math

import jax
import jax.numpy as jnp
from jax.experimental import pallas as pl
from jax.experimental.pallas import tpu as pltpu


def _round_up(x, m):
    return (x + m - 1) // m * m


# ----------------------------- fused Pallas kernel --------------------------------

def _lstm_fused_kernel(ids_ref, tbl_ref, whh_ref, bias_ref, wfc_ref, bfc_ref,
                       out_ref, *, seq_len, batch_tile, hidden, vocab_pad):
    """Embedding-gather + LSTM recurrence + classifier for one batch tile.

    ids_ref : (S, bt, 1)    int32  time-major token ids for this batch tile
    tbl_ref : (Vpad, 4H)    bf16   folded embedding @ W_ih  (gate order [i,f,o,g])
    whh_ref : (H, 4H)       bf16
    bias_ref: (1, 4H)       f32    b_ih + b_hh
    wfc_ref : (H, Cpad)     bf16   classifier weight, zero-padded to 128*k lanes
    bfc_ref : (1, Cpad)     f32
    out_ref : (bt, Cpad)    f32
    """
    S, bt, H, V = seq_len, batch_tile, hidden, vocab_pad

    # ---- embedding gather + input projection for ALL timesteps in one MXU pass.
    # one-hot(ids) @ gate_tbl  ==  embedding[ids] @ W_ih   (table row 0 is zero,
    # so padding_idx=0 tokens contribute nothing, matching nn.Embedding).
    ids = ids_ref[...]                                               # (S, bt, 1)
    iota = jax.lax.broadcasted_iota(jnp.int32, (S, bt, V), 2)
    onehot = (iota == ids).astype(jnp.bfloat16)                      # lane-broadcast
    xw = jnp.dot(onehot.reshape(S * bt, V), tbl_ref[...],
                 preferred_element_type=jnp.float32)                 # (S*bt, 4H)
    xw = xw + bias_ref[...]                                          # bias folded once

    whh = whh_ref[...]                                               # (H, 4H) bf16
    h = jnp.zeros((bt, H), jnp.float32)
    c = jnp.zeros((bt, H), jnp.float32)

    # Serial recurrence; S is small and static so fully unroll (LLO visibility).
    # TODO(synk): switch to lax.fori_loop(..., unroll=2-4) if seq_len grows
    # beyond ~32 so gate temporaries don't all stay live and spill vregs.
    for t in range(S):
        gates = xw[t * bt:(t + 1) * bt, :] + jnp.dot(
            h.astype(jnp.bfloat16), whh, preferred_element_type=jnp.float32)
        sig = jax.nn.sigmoid(gates[:, :3 * H])        # one EUP slab: [i | f | o]
        i_g = sig[:, 0 * H:1 * H]
        f_g = sig[:, 1 * H:2 * H]
        o_g = sig[:, 2 * H:3 * H]
        g_g = jnp.tanh(gates[:, 3 * H:])
        c = f_g * c + i_g * g_g
        h = o_g * jnp.tanh(c)

    # nn.Dropout(0.1) is identity at inference.
    # TODO(synk): training-mode dropout (pltpu.prng_random_bits mask) not implemented.
    out_ref[...] = jnp.dot(h.astype(jnp.bfloat16), wfc_ref[...],
                           preferred_element_type=jnp.float32) + bfc_ref[...]


def simple_lstm_forward(params, token_ids, num_classes):
    """embedding -> 1-layer LSTM -> dropout(identity) -> fc; logits (B, num_classes)."""
    B, S = token_ids.shape
    tbl = params["gate_tbl"]            # (Vpad, 4H) bf16
    w_hh = params["w_hh"]               # (H, 4H)    bf16
    bias = params["bias"]               # (1, 4H)    f32
    w_fc = params["w_fc"]               # (H, Cpad)  bf16
    b_fc = params["b_fc"]               # (1, Cpad)  f32
    H = w_hh.shape[0]
    Vpad = tbl.shape[0]
    Cpad = w_fc.shape[1]

    # Batch padding / tiling: sublane-align to 8; once B > 128 use 128-row tiles
    # so each tile fills the MXU M dim and the "parallel" grid axis can be
    # sharded across the two v7x TensorCores (single TC on v5e/v6e: no effect).
    B_pad = _round_up(B, 8) if B <= 128 else _round_up(B, 128)
    bt = min(B_pad, 128)
    n_tiles = B_pad // bt

    ids = token_ids.astype(jnp.int32)
    if B_pad != B:
        ids = jnp.pad(ids, ((0, B_pad - B), (0, 0)))      # pad rows = padding_idx=0
    ids_tm = jnp.transpose(ids, (1, 0))[:, :, None]        # (S, B_pad, 1), time-major

    kernel = functools.partial(_lstm_fused_kernel, seq_len=S, batch_tile=bt,
                               hidden=H, vocab_pad=Vpad)

    out = pl.pallas_call(
        kernel,
        grid=(n_tiles,),
        in_specs=[
            pl.BlockSpec((S, bt, 1), lambda i: (0, i, 0)),       # token ids tile
            pl.BlockSpec((Vpad, 4 * H), lambda i: (0, 0)),       # folded gate table
            pl.BlockSpec((H, 4 * H), lambda i: (0, 0)),          # W_hh
            pl.BlockSpec((1, 4 * H), lambda i: (0, 0)),          # combined bias
            pl.BlockSpec((H, Cpad), lambda i: (0, 0)),           # W_fc (padded)
            pl.BlockSpec((1, Cpad), lambda i: (0, 0)),           # b_fc (padded)
        ],
        out_specs=pl.BlockSpec((bt, Cpad), lambda i: (i, 0)),
        out_shape=jax.ShapeDtypeStruct((B_pad, Cpad), jnp.float32),
        compiler_params=pltpu.CompilerParams(
            dimension_semantics=("parallel",)),                  # batch tiles independent
    )(ids_tm, tbl, w_hh, bias, w_fc, b_fc)

    # Slice away the sublane/lane padding.
    return out[:B, :num_classes]


# ----------------------------- parameter init -------------------------------------

def init_params(key, vocab_size, embed_dim, hidden_dim, num_classes):
    k_emb, k_ih, k_hh, k_bih, k_bhh, k_fw, k_fb = jax.random.split(key, 7)
    H = hidden_dim
    s = 1.0 / math.sqrt(H)

    emb = jax.random.normal(k_emb, (vocab_size, embed_dim), jnp.float32)
    emb = emb.at[0].set(0.0)                                   # padding_idx=0

    # PyTorch nn.LSTM layout (transposed for right-matmul), gate order [i, f, g, o].
    w_ih = jax.random.uniform(k_ih, (embed_dim, 4 * H), jnp.float32, -s, s)
    w_hh = jax.random.uniform(k_hh, (H, 4 * H), jnp.float32, -s, s)
    b_ih = jax.random.uniform(k_bih, (4 * H,), jnp.float32, -s, s)
    b_hh = jax.random.uniform(k_bhh, (4 * H,), jnp.float32, -s, s)

    def reorder(w):
        # [i, f, g, o] (PyTorch) -> [i, f, o, g] so one sigmoid covers 3H.
        i, f, g, o = jnp.split(w, 4, axis=-1)
        return jnp.concatenate([i, f, o, g], axis=-1)

    w_ih_r = reorder(w_ih)
    w_hh_r = reorder(w_hh)
    bias_r = reorder((b_ih + b_hh)[None, :])                   # (1, 4H) f32

    # Fold embedding @ W_ih into a single gather table (row 0 stays zero).
    # Valid while vocab * 4H is small (100 x 512 bf16 ~ 100 KB here).
    v_pad = _round_up(vocab_size, 128)
    gate_tbl = jnp.zeros((v_pad, 4 * H), jnp.float32).at[:vocab_size].set(emb @ w_ih_r)

    # Classifier padded to a multiple of 128 lanes (cdiv round-up).
    c_pad = _round_up(max(num_classes, 1), 128)
    w_fc = jnp.zeros((H, c_pad), jnp.float32).at[:, :num_classes].set(
        jax.random.uniform(k_fw, (H, num_classes), jnp.float32, -s, s))
    b_fc = jnp.zeros((1, c_pad), jnp.float32).at[:, :num_classes].set(
        jax.random.uniform(k_fb, (1, num_classes), jnp.float32, -s, s))

    return {
        "gate_tbl": gate_tbl.astype(jnp.bfloat16),
        "w_hh": w_hh_r.astype(jnp.bfloat16),
        "bias": bias_r,                                        # f32
        "w_fc": w_fc.astype(jnp.bfloat16),
        "b_fc": b_fc,                                          # f32
    }


# ----------------------------- pure-JAX reference ----------------------------------

def reference_forward(params, token_ids, num_classes):
    """Same math, same gate order/precision choices, no Pallas."""
    tbl = params["gate_tbl"].astype(jnp.float32)
    w_hh = params["w_hh"].astype(jnp.float32)
    bias = params["bias"]
    w_fc = params["w_fc"].astype(jnp.float32)
    b_fc = params["b_fc"]
    B, S = token_ids.shape
    H = w_hh.shape[0]

    xw = tbl[token_ids] + bias                                  # (B, S, 4H)
    h = jnp.zeros((B, H), jnp.float32)
    c = jnp.zeros((B, H), jnp.float32)
    for t in range(S):
        gates = xw[:, t, :] + h.astype(jnp.bfloat16).astype(jnp.float32) @ w_hh
        i_g = jax.nn.sigmoid(gates[:, 0 * H:1 * H])
        f_g = jax.nn.sigmoid(gates[:, 1 * H:2 * H])
        o_g = jax.nn.sigmoid(gates[:, 2 * H:3 * H])
        g_g = jnp.tanh(gates[:, 3 * H:])
        c = f_g * c + i_g * g_g
        h = o_g * jnp.tanh(c)
    logits = h.astype(jnp.bfloat16).astype(jnp.float32) @ w_fc + b_fc
    return logits[:, :num_classes]


# ----------------------------------- main ------------------------------------------

if __name__ == "__main__":
    key = jax.random.PRNGKey(0)
    pkey, ikey = jax.random.split(key)

    VOCAB, EMBED, HIDDEN, CLASSES = 100, 64, 128, 2
    B, S = 8, 8          # B=8 fills all sublanes of the f32 h/c carries

    params = init_params(pkey, VOCAB, EMBED, HIDDEN, CLASSES)

    token_ids = jax.random.randint(ikey, (B, S), 1, VOCAB, dtype=jnp.int32)
    token_ids = token_ids.at[1, 5:].set(0)   # trailing padding tokens (padding_idx=0)
    # NOTE: like nn.LSTM without packed sequences, padding positions still run
    # through the recurrence (their embeddings are zero).

    fwd = jax.jit(simple_lstm_forward, static_argnums=2)
    logits = fwd(params, token_ids, CLASSES)
    jax.block_until_ready(logits)

    assert logits.shape == (B, CLASSES) and logits.dtype == jnp.float32
    assert bool(jnp.all(jnp.isfinite(logits)))

    ref = reference_forward(params, token_ids, CLASSES)
    assert jnp.allclose(logits, ref, atol=2e-2, rtol=2e-2), (logits, ref)

    print("KERNEL_OK")
</pallas_src>

<mosaic_0001>
module attributes {stable_mosaic.version = 11 : i64} {
  func.func @_lstm_fused_kernel(%arg0: i32, %arg1: memref<8x8x1xi32, #tpu.memory_space<vmem>>, %arg2: memref<128x512xbf16, #tpu.memory_space<vmem>>, %arg3: memref<128x512xbf16, #tpu.memory_space<vmem>>, %arg4: memref<1x512xf32, #tpu.memory_space<vmem>>, %arg5: memref<128x128xbf16, #tpu.memory_space<vmem>>, %arg6: memref<1x128xf32, #tpu.memory_space<vmem>>, %arg7: memref<8x128xf32, #tpu.memory_space<vmem>>) attributes {dimension_semantics = [#tpu.dimension_semantics<parallel>], iteration_bounds = array<i64: 1>, scalar_prefetch = 0 : i64, scratch_operands = 0 : i64, tpu.core_type = #tpu.core_type<tc>, window_params = [{transform_indices = @transform_0, window_bounds = array<i64: 8, 8, 1>}, {pipeline_mode = #tpu.pipeline_mode<synchronous>, transform_indices = @transform_1, window_bounds = array<i64: 128, 512>}, {pipeline_mode = #tpu.pipeline_mode<synchronous>, transform_indices = @transform_2, window_bounds = array<i64: 128, 512>}, {pipeline_mode = #tpu.pipeline_mode<synchronous>, transform_indices = @transform_3, window_bounds = array<i64: 1, 512>}, {pipeline_mode = #tpu.pipeline_mode<synchronous>, transform_indices = @transform_4, window_bounds = array<i64: 128, 128>}, {pipeline_mode = #tpu.pipeline_mode<synchronous>, transform_indices = @transform_5, window_bounds = array<i64: 1, 128>}, {transform_indices = @transform_6, window_bounds = array<i64: 8, 128>}]} {
    %c0 = arith.constant 0 : index
    %c0_0 = arith.constant 0 : index
    %c0_1 = arith.constant 0 : index
    %0 = vector.load %arg1[%c0, %c0_0, %c0_1] : memref<8x8x1xi32, #tpu.memory_space<vmem>>, vector<8x8x1xi32>
    %1 = tpu.iota {dimensions = array<i32: 2>} : vector<8x8x128xi32>
    %2 = vector.broadcast %0 : vector<8x8x1xi32> to vector<8x8x128xi32>
    %3 = arith.cmpi eq, %1, %2 : vector<8x8x128xi32>
    %4 = arith.extui %3 : vector<8x8x128xi1> to vector<8x8x128xi32>
    %5 = arith.sitofp %4 : vector<8x8x128xi32> to vector<8x8x128xf32>
    %6 = arith.truncf %5 : vector<8x8x128xf32> to vector<8x8x128xbf16>
    %7 = vector.shape_cast %6 : vector<8x8x128xbf16> to vector<64x128xbf16>
    %c0_2 = arith.constant 0 : index
    %c0_3 = arith.constant 0 : index
    %8 = vector.load %arg2[%c0_2, %c0_3] : memref<128x512xbf16, #tpu.memory_space<vmem>>, vector<128x512xbf16>
    %cst = arith.constant dense<0.000000e+00> : vector<64x512xf32>
    %9 = tpu.matmul %7, %8, %cst {dimension_numbers = #tpu.dot_dimension_numbers<[1], [0], [0], [1], [0, 0, 1, 1], [], []>} : vector<64x128xbf16>, vector<128x512xbf16>, vector<64x512xf32> -> vector<64x512xf32>
    %c0_4 = arith.constant 0 : index
    %c0_5 = arith.constant 0 : index
    %10 = vector.load %arg4[%c0_4, %c0_5] : memref<1x512xf32, #tpu.memory_space<vmem>>, vector<1x512xf32>
    %11 = vector.broadcast %10 : vector<1x512xf32> to vector<64x512xf32>
    %12 = arith.addf %9, %11 : vector<64x512xf32>
    %c0_6 = arith.constant 0 : index
    %c0_7 = arith.constant 0 : index
    %13 = vector.load %arg3[%c0_6, %c0_7] : memref<128x512xbf16, #tpu.memory_space<vmem>>, vector<128x512xbf16>
    %cst_8 = arith.constant 0.000000e+00 : f32
    %14 = vector.broadcast %cst_8 : f32 to vector<8x128xf32>
    %cst_9 = arith.constant 0.000000e+00 : f32
    %15 = vector.broadcast %cst_9 : f32 to vector<8x128xf32>
    %16 = vector.extract_strided_slice %12 {offsets = [0, 0], sizes = [8, 512], strides = [1, 1]} : vector<64x512xf32> to vector<8x512xf32>
    %17 = arith.truncf %14 : vector<8x128xf32> to vector<8x128xbf16>
    %cst_10 = arith.constant dense<0.000000e+00> : vector<8x512xf32>
    %18 = tpu.matmul %17, %13, %cst_10 {dimension_numbers = #tpu.dot_dimension_numbers<[1], [0], [0], [1], [0, 0, 1, 1], [], []>} : vector<8x128xbf16>, vector<128x512xbf16>, vector<8x512xf32> -> vector<8x512xf32>
    %19 = arith.addf %16, %18 : vector<8x512xf32>
    %20 = vector.extract_strided_slice %19 {offsets = [0, 0], sizes = [8, 384], strides = [1, 1]} : vector<8x512xf32> to vector<8x384xf32>
    %21 = arith.negf %20 : vector<8x384xf32>
    %22 = math.exp %21 : vector<8x384xf32>
    %cst_11 = arith.constant 1.000000e+00 : f32
    %23 = vector.broadcast %cst_11 : f32 to vector<8x384xf32>
    %24 = arith.addf %23, %22 : vector<8x384xf32>
    %25 = arith.divf %23, %24 : vector<8x384xf32>
    %26 = vector.extract_strided_slice %25 {offsets = [0, 0], sizes = [8, 128], strides = [1, 1]} : vector<8x384xf32> to vector<8x128xf32>
    %27 = vector.extract_strided_slice %25 {offsets = [0, 128], sizes = [8, 128], strides = [1, 1]} : vector<8x384xf32> to vector<8x128xf32>
    %28 = vector.extract_strided_slice %25 {offsets = [0, 256], sizes = [8, 128], strides = [1, 1]} : vector<8x384xf32> to vector<8x128xf32>
    %29 = vector.extract_strided_slice %19 {offsets = [0, 384], sizes = [8, 128], strides = [1, 1]} : vector<8x512xf32> to vector<8x128xf32>
    %30 = math.tanh %29 : vector<8x128xf32>
    %31 = arith.mulf %27, %15 : vector<8x128xf32>
    %32 = arith.mulf %26, %30 : vector<8x128xf32>
    %33 = arith.addf %31, %32 : vector<8x128xf32>
    %34 = math.tanh %33 : vector<8x128xf32>
    %35 = arith.mulf %28, %34 : vector<8x128xf32>
    %36 = vector.extract_strided_slice %12 {offsets = [8, 0], sizes = [8, 512], strides = [1, 1]} : vector<64x512xf32> to vector<8x512xf32>
    %37 = arith.truncf %35 : vector<8x128xf32> to vector<8x128xbf16>
    %cst_12 = arith.constant dense<0.000000e+00> : vector<8x512xf32>
    %38 = tpu.matmul %37, %13, %cst_12 {dimension_numbers = #tpu.dot_dimension_numbers<[1], [0], [0], [1], [0, 0, 1, 1], [], []>} : vector<8x128xbf16>, vector<128x512xbf16>, vector<8x512xf32> -> vector<8x512xf32>
    %39 = arith.addf %36, %38 : vector<8x512xf32>
    %40 = vector.extract_strided_slice %39 {offsets = [0, 0], sizes = [8, 384], strides = [1, 1]} : vector<8x512xf32> to vector<8x384xf32>
    %41 = arith.negf %40 : vector<8x384xf32>
    %42 = math.exp %41 : vector<8x384xf32>
    %cst_13 = arith.constant 1.000000e+00 : f32
    %43 = vector.broadcast %cst_13 : f32 to vector<8x384xf32>
    %44 = arith.addf %43, %42 : vector<8x384xf32>
    %45 = arith.divf %43, %44 : vector<8x384xf32>
    %46 = vector.extract_strided_slice %45 {offsets = [0, 0], sizes = [8, 128], strides = [1, 1]} : vector<8x384xf32> to vector<8x128xf32>
    %47 = vector.extract_strided_slice %45 {offsets = [0, 128], sizes = [8, 128], strides = [1, 1]} : vector<8x384xf32> to vector<8x128xf32>
    %48 = vector.extract_strided_slice %45 {offsets = [0, 256], sizes = [8, 128], strides = [1, 1]} : vector<8x384xf32> to vector<8x128xf32>
    %49 = vector.extract_strided_slice %39 {offsets = [0, 384], sizes = [8, 128], strides = [1, 1]} : vector<8x512xf32> to vector<8x128xf32>
    %50 = math.tanh %49 : vector<8x128xf32>
    %51 = arith.mulf %47, %33 : vector<8x128xf32>
    %52 = arith.mulf %46, %50 : vector<8x128xf32>
    %53 = arith.addf %51, %52 : vector<8x128xf32>
    %54 = math.tanh %53 : vector<8x128xf32>
    %55 = arith.mulf %48, %54 : vector<8x128xf32>
    %56 = vector.extract_strided_slice %12 {offsets = [16, 0], sizes = [8, 512], strides = [1, 1]} : vector<64x512xf32> to vector<8x512xf32>
    %57 = arith.truncf %55 : vector<8x128xf32> to vector<8x128xbf16>
    %cst_14 = arith.constant dense<0.000000e+00> : vector<8x512xf32>
    %58 = tpu.matmul %57, %13, %cst_14 {dimension_numbers = #tpu.dot_dimension_numbers<[1], [0], [0], [1], [0, 0, 1, 1], [], []>} : vector<8x128xbf16>, vector<128x512xbf16>, vector<8x512xf32> -> vector<8x512xf32>
    %59 = arith.addf %56, %58 : vector<8x512xf32>
    %60 = vector.extract_strided_slice %59 {offsets = [0, 0], sizes = [8, 384], strides = [1, 1]} : vector<8x512xf32> to vector<8x384xf32>
    %61 = arith.negf %60 : vector<8x384xf32>
    %62 = math.exp %61 : vector<8x384xf32>
    %cst_15 = arith.constant 1.000000e+00 : f32
    %63 = vector.broadcast %cst_15 : f32 to vector<8x384xf32>
    %64 = arith.addf %63, %62 : vector<8x384xf32>
    %65 = arith.divf %63, %64 : vector<8x384xf32>
    %66 = vector.extract_strided_slice %65 {offsets = [0, 0], sizes = [8, 128], strides = [1, 1]} : vector<8x384xf32> to vector<8x128xf32>
    %67 = vector.extract_strided_slice %65 {offsets = [0, 128], sizes = [8, 128], strides = [1, 1]} : vector<8x384xf32> to vector<8x128xf32>
    %68 = vector.extract_strided_slice %65 {offsets = [0, 256], sizes = [8, 128], strides = [1, 1]} : vector<8x384xf32> to vector<8x128xf32>
    %69 = vector.extract_strided_slice %59 {offsets = [0, 384], sizes = [8, 128], strides = [1, 1]} : vector<8x512xf32> to vector<8x128xf32>
    %70 = math.tanh %69 : vector<8x128xf32>
    %71 = arith.mulf %67, %53 : vector<8x128xf32>
    %72 = arith.mulf %66, %70 : vector<8x128xf32>
    %73 = arith.addf %71, %72 : vector<8x128xf32>
    %74 = math.tanh %73 : vector<8x128xf32>
    %75 = arith.mulf %68, %74 : vector<8x128xf32>
    %76 = vector.extract_strided_slice %12 {offsets = [24, 0], sizes = [8, 512], strides = [1, 1]} : vector<64x512xf32> to vector<8x512xf32>
    %77 = arith.truncf %75 : vector<8x128xf32> to vector<8x128xbf16>
    %cst_16 = arith.constant dense<0.000000e+00> : vector<8x512xf32>
    %78 = tpu.matmul %77, %13, %cst_16 {dimension_numbers = #tpu.dot_dimension_numbers<[1], [0], [0], [1], [0, 0, 1, 1], [], []>} : vector<8x128xbf16>, vector<128x512xbf16>, vector<8x512xf32> -> vector<8x512xf32>
    %79 = arith.addf %76, %78 : vector<8x512xf32>
    %80 = vector.extract_strided_slice %79 {offsets = [0, 0], sizes = [8, 384], strides = [1, 1]} : vector<8x512xf32> to vector<8x384xf32>
    %81 = arith.negf %80 : vector<8x384xf32>
    %82 = math.exp %81 : vector<8x384xf32>
    %cst_17 = arith.constant 1.000000e+00 : f32
    %83 = vector.broadcast %cst_17 : f32 to vector<8x384xf32>
    %84 = arith.addf %83, %82 : vector<8x384xf32>
    %85 = arith.divf %83, %84 : vector<8x384xf32>
    %86 = vector.extract_strided_slice %85 {offsets = [0, 0], sizes = [8, 128], strides = [1, 1]} : vector<8x384xf32> to vector<8x128xf32>
    %87 = vector.extract_strided_slice %85 {offsets = [0, 128], sizes = [8, 128], strides = [1, 1]} : vector<8x384xf32> to vector<8x128xf32>
    %88 = vector.extract_strided_slice %85 {offsets = [0, 256], sizes = [8, 128], strides = [1, 1]} : vector<8x384xf32> to vector<8x128xf32>
    %89 = vector.extract_strided_slice %79 {offsets = [0, 384], sizes = [8, 128], strides = [1, 1]} : vector<8x512xf32> to vector<8x128xf32>
    %90 = math.tanh %89 : vector<8x128xf32>
    %91 = arith.mulf %87, %73 : vector<8x128xf32>
    %92 = arith.mulf %86, %90 : vector<8x128xf32>
    %93 = arith.addf %91, %92 : vector<8x128xf32>
    %94 = math.tanh %93 : vector<8x128xf32>
    %95 = arith.mulf %88, %94 : vector<8x128xf32>
    %96 = vector.extract_strided_slice %12 {offsets = [32, 0], sizes = [8, 512], strides = [1, 1]} : vector<64x512xf32> to vector<8x512xf32>
    %97 = arith.truncf %95 : vector<8x128xf32> to vector<8x128xbf16>
    %cst_18 = arith.constant dense<0.000000e+00> : vector<8x512xf32>
    %98 = tpu.matmul %97, %13, %cst_18 {dimension_numbers = #tpu.dot_dimension_numbers<[1], [0], [0], [1], [0, 0, 1, 1], [], []>} : vector<8x128xbf16>, vector<128x512xbf16>, vector<8x512xf32> -> vector<8x512xf32>
    %99 = arith.addf %96, %98 : vector<8x512xf32>
    %100 = vector.extract_strided_slice %99 {offsets = [0, 0], sizes = [8, 384], strides = [1, 1]} : vector<8x512xf32> to vector<8x384xf32>
    %101 = arith.negf %100 : vector<8x384xf32>
    %102 = math.exp %101 : vector<8x384xf32>
    %cst_19 = arith.constant 1.000000e+00 : f32
    %103 = vector.broadcast %cst_19 : f32 to vector<8x384xf32>
    %104 = arith.addf %103, %102 : vector<8x384xf32>
    %105 = arith.divf %103, %104 : vector<8x384xf32>
    %106 = vector.extract_strided_slice %105 {offsets = [0, 0], sizes = [8, 128], strides = [1, 1]} : vector<8x384xf32> to vector<8x128xf32>
    %107 = vector.extract_strided_slice %105 {offsets = [0, 128], sizes = [8, 128], strides = [1, 1]} : vector<8x384xf32> to vector<8x128xf32>
    %108 = vector.extract_strided_slice %105 {offsets = [0, 256], sizes = [8, 128], strides = [1, 1]} : vector<8x384xf32> to vector<8x128xf32>
    %109 = vector.extract_strided_slice %99 {offsets = [0, 384], sizes = [8, 128], strides = [1, 1]} : vector<8x512xf32> to vector<8x128xf32>
    %110 = math.tanh %109 : vector<8x128xf32>
    %111 = arith.mulf %107, %93 : vector<8x128xf32>
    %112 = arith.mulf %106, %110 : vector<8x128xf32>
    %113 = arith.addf %111, %112 : vector<8x128xf32>
    %114 = math.tanh %113 : vector<8x128xf32>
    %115 = arith.mulf %108, %114 : vector<8x128xf32>
    %116 = vector.extract_strided_slice %12 {offsets = [40, 0], sizes = [8, 512], strides = [1, 1]} : vector<64x512xf32> to vector<8x512xf32>
    %117 = arith.truncf %115 : vector<8x128xf32> to vector<8x128xbf16>
    %cst_20 = arith.constant dense<0.000000e+00> : vector<8x512xf32>
    %118 = tpu.matmul %117, %13, %cst_20 {dimension_numbers = #tpu.dot_dimension_numbers<[1], [0], [0], [1], [0, 0, 1, 1], [], []>} : vector<8x128xbf16>, vector<128x512xbf16>, vector<8x512xf32> -> vector<8x512xf32>
    %119 = arith.addf %116, %118 : vector<8x512xf32>
    %120 = vector.extract_strided_slice %119 {offsets = [0, 0], sizes = [8, 384], strides = [1, 1]} : vector<8x512xf32> to vector<8x384xf32>
    %121 = arith.negf %120 : vector<8x384xf32>
    %122 = math.exp %121 : vector<8x384xf32>
    %cst_21 = arith.constant 1.000000e+00 : f32
    %123 = vector.broadcast %cst_21 : f32 to vector<8x384xf32>
    %124 = arith.addf %123, %122 : vector<8x384xf32>
    %125 = arith.divf %123, %124 : vector<8x384xf32>
    %126 = vector.extract_strided_slice %125 {offsets = [0, 0], sizes = [8, 128], strides = [1, 1]} : vector<8x384xf32> to vector<8x128xf32>
    %127 = vector.extract_strided_slice %125 {offsets = [0, 128], sizes = [8, 128], strides = [1, 1]} : vector<8x384xf32> to vector<8x128xf32>
    %128 = vector.extract_strided_slice %125 {offsets = [0, 256], sizes = [8, 128], strides = [1, 1]} : vector<8x384xf32> to vector<8x128xf32>
    %129 = vector.extract_strided_slice %119 {offsets = [0, 384], sizes = [8, 128], strides = [1, 1]} : vector<8x512xf32> to vector<8x128xf32>
    %130 = math.tanh %129 : vector<8x128xf32>
    %131 = arith.mulf %127, %113 : vector<8x128xf32>
    %132 = arith.mulf %126, %130 : vector<8x128xf32>
    %133 = arith.addf %131, %132 : vector<8x128xf32>
    %134 = math.tanh %133 : vector<8x128xf32>
    %135 = arith.mulf %128, %134 : vector<8x128xf32>
    %136 = vector.extract_strided_slice %12 {offsets = [48, 0], sizes = [8, 512], strides = [1, 1]} : vector<64x512xf32> to vector<8x512xf32>
    %137 = arith.truncf %135 : vector<8x128xf32> to vector<8x128xbf16>
    %cst_22 = arith.constant dense<0.000000e+00> : vector<8x512xf32>
    %138 = tpu.matmul %137, %13, %cst_22 {dimension_numbers = #tpu.dot_dimension_numbers<[1], [0], [0], [1], [0, 0, 1, 1], [], []>} : vector<8x128xbf16>, vector<128x512xbf16>, vector<8x512xf32> -> vector<8x512xf32>
    %139 = arith.addf %136, %138 : vector<8x512xf32>
    %140 = vector.extract_strided_slice %139 {offsets = [0, 0], sizes = [8, 384], strides = [1, 1]} : vector<8x512xf32> to vector<8x384xf32>
    %141 = arith.negf %140 : vector<8x384xf32>
    %142 = math.exp %141 : vector<8x384xf32>
    %cst_23 = arith.constant 1.000000e+00 : f32
    %143 = vector.broadcast %cst_23 : f32 to vector<8x384xf32>
    %144 = arith.addf %143, %142 : vector<8x384xf32>
    %145 = arith.divf %143, %144 : vector<8x384xf32>
    %146 = vector.extract_strided_slice %145 {offsets = [0, 0], sizes = [8, 128], strides = [1, 1]} : vector<8x384xf32> to vector<8x128xf32>
    %147 = vector.extract_strided_slice %145 {offsets = [0, 128], sizes = [8, 128], strides = [1, 1]} : vector<8x384xf32> to vector<8x128xf32>
    %148 = vector.extract_strided_slice %145 {offsets = [0, 256], sizes = [8, 128], strides = [1, 1]} : vector<8x384xf32> to vector<8x128xf32>
    %149 = vector.extract_strided_slice %139 {offsets = [0, 384], sizes = [8, 128], strides = [1, 1]} : vector<8x512xf32> to vector<8x128xf32>
    %150 = math.tanh %149 : vector<8x128xf32>
    %151 = arith.mulf %147, %133 : vector<8x128xf32>
    %152 = arith.mulf %146, %150 : vector<8x128xf32>
    %153 = arith.addf %151, %152 : vector<8x128xf32>
    %154 = math.tanh %153 : vector<8x128xf32>
    %155 = arith.mulf %148, %154 : vector<8x128xf32>
    %156 = vector.extract_strided_slice %12 {offsets = [56, 0], sizes = [8, 512], strides = [1, 1]} : vector<64x512xf32> to vector<8x512xf32>
    %157 = arith.truncf %155 : vector<8x128xf32> to vector<8x128xbf16>
    %cst_24 = arith.constant dense<0.000000e+00> : vector<8x512xf32>
    %158 = tpu.matmul %157, %13, %cst_24 {dimension_numbers = #tpu.dot_dimension_numbers<[1], [0], [0], [1], [0, 0, 1, 1], [], []>} : vector<8x128xbf16>, vector<128x512xbf16>, vector<8x512xf32> -> vector<8x512xf32>
    %159 = arith.addf %156, %158 : vector<8x512xf32>
    %160 = vector.extract_strided_slice %159 {offsets = [0, 0], sizes = [8, 384], strides = [1, 1]} : vector<8x512xf32> to vector<8x384xf32>
    %161 = arith.negf %160 : vector<8x384xf32>
    %162 = math.exp %161 : vector<8x384xf32>
    %cst_25 = arith.constant 1.000000e+00 : f32
    %163 = vector.broadcast %cst_25 : f32 to vector<8x384xf32>
    %164 = arith.addf %163, %162 : vector<8x384xf32>
    %165 = arith.divf %163, %164 : vector<8x384xf32>
    %166 = vector.extract_strided_slice %165 {offsets = [0, 0], sizes = [8, 128], strides = [1, 1]} : vector<8x384xf32> to vector<8x128xf32>
    %167 = vector.extract_strided_slice %165 {offsets = [0, 128], sizes = [8, 128], strides = [1, 1]} : vector<8x384xf32> to vector<8x128xf32>
    %168 = vector.extract_strided_slice %165 {offsets = [0, 256], sizes = [8, 128], strides = [1, 1]} : vector<8x384xf32> to vector<8x128xf32>
    %169 = vector.extract_strided_slice %159 {offsets = [0, 384], sizes = [8, 128], strides = [1, 1]} : vector<8x512xf32> to vector<8x128xf32>
    %170 = math.tanh %169 : vector<8x128xf32>
    %171 = arith.mulf %167, %153 : vector<8x128xf32>
    %172 = arith.mulf %166, %170 : vector<8x128xf32>
    %173 = arith.addf %171, %172 : vector<8x128xf32>
    %174 = math.tanh %173 : vector<8x128xf32>
    %175 = arith.mulf %168, %174 : vector<8x128xf32>
    %176 = arith.truncf %175 : vector<8x128xf32> to vector<8x128xbf16>
    %c0_26 = arith.constant 0 : index
    %c0_27 = arith.constant 0 : index
    %177 = vector.load %arg5[%c0_26, %c0_27] : memref<128x128xbf16, #tpu.memory_space<vmem>>, vector<128x128xbf16>
    %cst_28 = arith.constant dense<0.000000e+00> : vector<8x128xf32>
    %178 = tpu.matmul %176, %177, %cst_28 {dimension_numbers = #tpu.dot_dimension_numbers<[1], [0], [0], [1], [0, 0, 1, 1], [], []>} : vector<8x128xbf16>, vector<128x128xbf16>, vector<8x128xf32> -> vector<8x128xf32>
    %c0_29 = arith.constant 0 : index
    %c0_30 = arith.constant 0 : index
    %179 = vector.load %arg6[%c0_29, %c0_30] : memref<1x128xf32, #tpu.memory_space<vmem>>, vector<1x128xf32>
    %180 = vector.broadcast %179 : vector<1x128xf32> to vector<8x128xf32>
    %181 = arith.addf %178, %180 : vector<8x128xf32>
    %c0_31 = arith.constant 0 : index
    %c0_32 = arith.constant 0 : index
    %182 = vector.load %arg7[%c0_31, %c0_32] : memref<8x128xf32, #tpu.memory_space<vmem>>, vector<8x128xf32>
    tpu.vector_store %arg7[%c0_31, %c0_32], %181 {strides = array<i32>} : memref<8x128xf32, #tpu.memory_space<vmem>>, vector<8x128xf32>,
    return
  }
  func.func @transform_0(%arg0: i32) -> (i32, i32, i32) {
    %c0_i32 = arith.constant 0 : i32
    %c0_i32_0 = arith.constant 0 : i32
    %c0_i32_1 = arith.constant 0 : i32
    return %c0_i32, %arg0, %c0_i32_0 : i32, i32, i32
  }
  func.func @transform_1(%arg0: i32) -> (i32, i32) {
    %c0_i32 = arith.constant 0 : i32
    %c0_i32_0 = arith.constant 0 : i32
    %c0_i32_1 = arith.constant 0 : i32
    return %c0_i32, %c0_i32_0 : i32, i32
  }
  func.func @transform_2(%arg0: i32) -> (i32, i32) {
    %c0_i32 = arith.constant 0 : i32
    %c0_i32_0 = arith.constant 0 : i32
    %c0_i32_1 = arith.constant 0 : i32
    return %c0_i32, %c0_i32_0 : i32, i32
  }
  func.func @transform_3(%arg0: i32) -> (i32, i32) {
    %c0_i32 = arith.constant 0 : i32
    %c0_i32_0 = arith.constant 0 : i32
    %c0_i32_1 = arith.constant 0 : i32
    return %c0_i32, %c0_i32_0 : i32, i32
  }
  func.func @transform_4(%arg0: i32) -> (i32, i32) {
    %c0_i32 = arith.constant 0 : i32
    %c0_i32_0 = arith.constant 0 : i32
    %c0_i32_1 = arith.constant 0 : i32
    return %c0_i32, %c0_i32_0 : i32, i32
  }
  func.func @transform_5(%arg0: i32) -> (i32, i32) {
    %c0_i32 = arith.constant 0 : i32
    %c0_i32_0 = arith.constant 0 : i32
    %c0_i32_1 = arith.constant 0 : i32
    return %c0_i32, %c0_i32_0 : i32, i32
  }
  func.func @transform_6(%arg0: i32) -> (i32, i32) {
    %c0_i32 = arith.constant 0 : i32
    %c0_i32_0 = arith.constant 0 : i32
    return %arg0, %c0_i32 : i32, i32
  }
}

</mosaic_0001>

<bundles_post_ra>
// kernel: simple_lstm_forward.1
= control target key start
LH: loop header
LB: loop body
LE: loop exit
PB: predicated region body
PF: predicated region fallthrough
CT: control target
= control target key end

     0   :  { %11 = vsyncpa [#allocation3], 0  ;;  %s2828_s0 = inlined_call_operand.vmem [shape: s32[8,8,1], index: 0, kind: input, shape index: {}]   ;;  %s2829_s1 = inlined_call_operand.hbm [shape: bf16[128,512], index: 1, kind: input, shape index: {}]   ;;  %s2830_s2 = inlined_call_operand.hbm [shape: bf16[128,512], index: 2, kind: input, shape index: {}]   ;;  %s2831_s3 = inlined_call_operand.vmem [shape: f32[1,512], index: 3, kind: input, shape index: {}]   ;;  %s2832_s4 = inlined_call_operand.vmem [shape: bf16[128,128], index: 4, kind: input, shape index: {}]   ;;  %s2833_s5 = inlined_call_operand.vmem [shape: f32[1,128], index: 5, kind: input, shape index: {}]   ;;  %s2834_s6 = inlined_call_operand.vmem [shape: f32[8,128], index: 6, kind: output, shape index: {}]  }
   0x1   :  { %12 = vsyncpa [#allocation5], 0  ;;  %s2176_s21 = smov [#allocation2]  }
   0x2   :  { %s20_s22 = sshll.u32 %s2176_s21, 4  ;;  %s21_s22 = int_to_ptr.vmem [resolvable:$true] %s20_s22 }
   0x3   :  { %s2140_s23 = scalar_lea.vmem %s21_s22, 4096  ;;  %p2145_p1 = scmp.lt.s32.totalorder %s21_s22, %s21_s22 }
   0x4   :  { %p2141_p0 = scmp.ne.s32.totalorder %s21_s22, %s2140_s23  ;;  %p2146_p2 = scmp.lt.s32.totalorder %s2140_s23, %s2140_s23 }
   0x6   :  { %p2147_p3 = por %p2146_p2, %p2145_p1 }
   0x8   :  { %p2148_p4 = pnand %p2147_p3, %p2141_p0 }
   0xa   :  { %2151 = shalt.err (!%p2148_p4)
}
   0xb   :  { %s2177_s24 = smov 256   ;;  %s2178_s25 = smov 16  }
   0xc   :  { %26 = dma.hbm_to_vmem [thread:$0]  %s2829_s1, 4096, %s21_s22, [#allocation3], %s2177_s24, %s2177_s24, %s2178_s25  }
   0xd   :  { %s2179_s28 = smov [#allocation4]  }
   0xe   :  { %s32_s29 = sshll.u32 %s2179_s28, 4  ;;  %s33_s29 = int_to_ptr.vmem [resolvable:$true] %s32_s29 }
   0xf   :  { %s2160_s30 = scalar_lea.vmem %s33_s29, 4096  ;;  %p2165_p6 = scmp.lt.s32.totalorder %s33_s29, %s33_s29 }
  0x10   :  { %p2161_p5 = scmp.ne.s32.totalorder %s33_s29, %s2160_s30  ;;  %p2166_p7 = scmp.lt.s32.totalorder %s2160_s30, %s2160_s30 }
  0x12   :  { %p2167_p8 = por %p2166_p7, %p2165_p6 }
  0x14   :  { %p2168_p9 = pnand %p2167_p8, %p2161_p5 }
  0x16   :  { %2171 = shalt.err (!%p2168_p9)
}
  0x17   :  { %38 = dma.hbm_to_vmem [thread:$0]  %s2830_s2, 4096, %s33_s29, [#allocation5], %s2177_s24, %s2177_s24, %s2178_s25  }
  0x18   :  { %2172 = dma.done.wait [#allocation3], 4096  }
  0x19   :  { %2173 = vsyncadd [#allocation3], 4294963200 }
  0x1a   :  { %2174 = dma.done.wait [#allocation5], 4096  }
  0x1b   :  { %2175 = vsyncadd [#allocation5], 4294963200  ;;  %v2835_v0 = vmov 0   ;;  %v54_v1 = vld [vmem:[%s2828_s0 + $0x10] sm:$0xff]  ;;  %v52_v2 = vld [vmem:[%s2828_s0] sm:$0xff]  ;;  %v60_v43 = vlaneseq  ;;  %vm2183_vm12 = vmmov 0  }
  0x1c   :  { %1867 = vset.pattern.permute.xlu1 %v2835_v0  ;;  %1866 = vset.pattern.permute.xlu0 %v2835_v0  ;;  %v55_v3 = vld [vmem:[%s2828_s0 + $0x18] sm:$0xff]  ;;  %v53_v4 = vld [vmem:[%s2828_s0 + $0x8] sm:$0xff]  ;;  %v1868_v5 = vld [vmem:[#allocation2 + $0xe4] ss:$16 sps:$4 sm:$0xff]   ;;  %v2181_v52 = vmov 1.0|1.0  }
  0x1d   :  { %388 = vmatprep.mubr.bf16.mxu0 %v2835_v0  ;;  %461 = vmatprep.mubr.bf16.mxu1 %v2835_v0  ;;  %v1870_v6 = vld [vmem:[#allocation2 + $0xe0] ss:$16 sps:$4 sm:$0xff]   ;;  %v57_v7 = vld [vmem:[%s2828_s0 + $0x28] sm:$0xff]  ;;  %v1874_v11 = vld [vmem:[#allocation2 + $0xc4] ss:$16 sps:$4 sm:$0xff]   ;;  %v2260_v45 = vand.u32 127, %v60_v43 }
  0x1e   :  { %69 = vperm.xlu1 %1867, %v54_v1   ;;  %63 = vperm.xlu0 %1866, %v52_v2   ;;  %v56_v8 = vld [vmem:[%s2828_s0 + $0x20] sm:$0xff]  ;;  %v1871_v9 = vld [vmem:[#allocation2 + $0xec] ss:$16 sps:$4 sm:$0xff]   ;;  %v1873_v10 = vld [vmem:[#allocation2 + $0xe8] ss:$16 sps:$4 sm:$0xff]  }
  0x1f   :  { %356 = vmatprep.subr.bf16.mxu0 %v1868_v5  ;;  %429 = vmatprep.subr.bf16.mxu1 %v1871_v9  ;;  %v1876_v12 = vld [vmem:[#allocation2 + $0xc0] ss:$16 sps:$4 sm:$0xff]   ;;  %v1877_v13 = vld [vmem:[#allocation2 + $0xcc] ss:$16 sps:$4 sm:$0xff]   ;;  %v1879_v14 = vld [vmem:[#allocation2 + $0xc8] ss:$16 sps:$4 sm:$0xff]  }
  0x20   :  { %357 = vmatpush1.bf16.msra.mxu0 %v1870_v6  ;;  %430 = vmatpush1.bf16.msra.mxu1 %v1873_v10  ;;  %v59_v15 = vld [vmem:[%s2828_s0 + $0x38] sm:$0xff]  ;;  %v1880_v16 = vld [vmem:[#allocation2 + $0xa4] ss:$16 sps:$4 sm:$0xff]   ;;  %v1882_v18 = vld [vmem:[#allocation2 + $0xa0] ss:$16 sps:$4 sm:$0xff]  }
  0x21   :  { %358 = vmatprep.subr.bf16.mxu0 %v1874_v11  ;;  %v58_v17 = vld [vmem:[%s2828_s0 + $0x30] sm:$0xff]  ;;  %431 = vmatprep.subr.bf16.mxu1 %v1877_v13  ;;  %v1883_v19 = vld [vmem:[#allocation2 + $0xac] ss:$16 sps:$4 sm:$0xff]   ;;  %v1885_v20 = vld [vmem:[#allocation2 + $0xa8] ss:$16 sps:$4 sm:$0xff]  }
  0x22   :  { %72 = vperm.xlu1 %1867, %v55_v3   ;;  %66 = vperm.xlu0 %1866, %v53_v4   ;;  %v1886_v21 = vld [vmem:[#allocation2 + $0x84] ss:$16 sps:$4 sm:$0xff]   ;;  %v1889_v22 = vld [vmem:[#allocation2 + $0x8c] ss:$16 sps:$4 sm:$0xff]   ;;  %v1888_v23 = vld [vmem:[#allocation2 + $0x80] ss:$16 sps:$4 sm:$0xff]  }
  0x23   :  { %v1891_v24 = vld [vmem:[#allocation2 + $0x88] ss:$16 sps:$4 sm:$0xff]   ;;  %v1892_v25 = vld [vmem:[#allocation2 + $0x64] ss:$16 sps:$4 sm:$0xff]   ;;  %v1895_v26 = vld [vmem:[#allocation2 + $0x6c] ss:$16 sps:$4 sm:$0xff]  }
  0x24   :  { %359 = vmatpush1.bf16.msra.mxu0 %v1876_v12  ;;  %432 = vmatpush1.bf16.msra.mxu1 %v1879_v14  ;;  %v1894_v27 = vld [vmem:[#allocation2 + $0x60] ss:$16 sps:$4 sm:$0xff]   ;;  %v1897_v28 = vld [vmem:[#allocation2 + $0x68] ss:$16 sps:$4 sm:$0xff]   ;;  %v1898_v29 = vld [vmem:[#allocation2 + $0x44] ss:$16 sps:$4 sm:$0xff]  }
  0x25   :  { %360 = vmatprep.subr.bf16.mxu0 %v1880_v16  ;;  %433 = vmatprep.subr.bf16.mxu1 %v1883_v19  ;;  %v1901_v30 = vld [vmem:[#allocation2 + $0x4c] ss:$16 sps:$4 sm:$0xff]   ;;  %v1900_v31 = vld [vmem:[#allocation2 + $0x40] ss:$16 sps:$4 sm:$0xff]   ;;  %v1903_v32 = vld [vmem:[#allocation2 + $0x48] ss:$16 sps:$4 sm:$0xff]  }
  0x26   :  { %78 = vperm.xlu1 %1867, %v57_v7   ;;  %75 = vperm.xlu0 %1866, %v56_v8   ;;  %v1904_v33 = vld [vmem:[#allocation2 + $0x24] ss:$16 sps:$4 sm:$0xff]   ;;  %v1907_v34 = vld [vmem:[#allocation2 + $0x2c] ss:$16 sps:$4 sm:$0xff]   ;;  %v1906_v35 = vld [vmem:[#allocation2 + $0x20] ss:$16 sps:$4 sm:$0xff]  }
  0x27   :  { %v1909_v36 = vld [vmem:[#allocation2 + $0x28] ss:$16 sps:$4 sm:$0xff]   ;;  %v1910_v37 = vld [vmem:[#allocation2 + $0x4] ss:$16 sps:$4 sm:$0xff]   ;;  %v1913_v38 = vld [vmem:[#allocation2 + $0xc] ss:$16 sps:$4 sm:$0xff]  }
  0x28   :  { %361 = vmatpush1.bf16.msra.mxu0 %v1882_v18  ;;  %434 = vmatpush1.bf16.msra.mxu1 %v1885_v20  ;;  %v1912_v39 = vld [vmem:[#allocation2] ss:$16 sps:$4 sm:$0xff]   ;;  %v1915_v40 = vld [vmem:[#allocation2 + $0x8] ss:$16 sps:$4 sm:$0xff]   ;;  %v2253_v41 = vld [vmem:[#allocation4 + $0xe4] ss:$16 sps:$4 sm:$0xff]  }
  0x29   :  { %362 = vmatprep.subr.bf16.mxu0 %v1886_v21  ;;  %435 = vmatprep.subr.bf16.mxu1 %v1889_v22  ;;  %v2255_v42 = vld [vmem:[#allocation4 + $0xec] ss:$16 sps:$4 sm:$0xff]   ;;  %v2263_v48 = vld [vmem:[#allocation4 + $0xe0] ss:$16 sps:$4 sm:$0xff]   ;;  %v2265_v49 = vld [vmem:[#allocation4 + $0xe8] ss:$16 sps:$4 sm:$0xff]  }
  0x2a   :  { %84 = vperm.xlu1 %1867, %v59_v15   ;;  %81 = vperm.xlu0 %1866, %v58_v17   ;;  %v2268_v50 = vld [vmem:[#allocation4 + $0xc4] ss:$16 sps:$4 sm:$0xff]   ;;  %v2270_v51 = vld [vmem:[#allocation4 + $0xcc] ss:$16 sps:$4 sm:$0xff]   ;;  %v2276_v53 = vld [vmem:[#allocation4 + $0xc0] ss:$16 sps:$4 sm:$0xff]  }
  0x2b   :  { %v2278_v54 = vld [vmem:[#allocation4 + $0xc8] ss:$16 sps:$4 sm:$0xff]   ;;  %v2282_v55 = vld [vmem:[#allocation4 + $0xa4] ss:$16 sps:$4 sm:$0xff]   ;;  %v2284_v56 = vld [vmem:[#allocation4 + $0xac] ss:$16 sps:$4 sm:$0xff]  }
  0x2c   :  { %363 = vmatpush1.bf16.msra.mxu0 %v1888_v23  ;;  %436 = vmatpush1.bf16.msra.mxu1 %v1891_v24  ;;  %v2292_v58 = vld [vmem:[#allocation4 + $0xa0] ss:$16 sps:$4 sm:$0xff]   ;;  %v2294_v59 = vld [vmem:[#allocation4 + $0xa8] ss:$16 sps:$4 sm:$0xff]   ;;  %v2298_v60 = vld [vmem:[#allocation4 + $0x84] ss:$16 sps:$4 sm:$0xff]  }
  0x2d   :  { %364 = vmatprep.subr.bf16.mxu0 %v1892_v25  ;;  %437 = vmatprep.subr.bf16.mxu1 %v1895_v26  ;;  %v2300_v61 = vld [vmem:[#allocation4 + $0x8c] ss:$16 sps:$4 sm:$0xff]   ;;  %v2306_v1 = vld [vmem:[#allocation4 + $0x80] ss:$16 sps:$4 sm:$0xff]   ;;  %v2308_v2 = vld [vmem:[#allocation4 + $0x88] ss:$16 sps:$4 sm:$0xff]  }
  0x2e   :  { %v2312_v3 = vld [vmem:[#allocation4 + $0x64] ss:$16 sps:$4 sm:$0xff]   ;;  %v2314_v4 = vld [vmem:[#allocation4 + $0x6c] ss:$16 sps:$4 sm:$0xff]   ;;  %v2322_v5 = vld [vmem:[#allocation4 + $0x60] ss:$16 sps:$4 sm:$0xff]  }
  0x2f   :  { %v2324_v6 = vld [vmem:[#allocation4 + $0x68] ss:$16 sps:$4 sm:$0xff]   ;;  %v2328_v7 = vld [vmem:[#allocation4 + $0x44] ss:$16 sps:$4 sm:$0xff]   ;;  %v2330_v8 = vld [vmem:[#allocation4 + $0x4c] ss:$16 sps:$4 sm:$0xff]  }
  0x30   :  { %365 = vmatpush1.bf16.msra.mxu0 %v1894_v27  ;;  %438 = vmatpush1.bf16.msra.mxu1 %v1897_v28  ;;  %v2336_v11 = vld [vmem:[#allocation4 + $0x40] ss:$16 sps:$4 sm:$0xff]   ;;  %v2338_v12 = vld [vmem:[#allocation4 + $0x48] ss:$16 sps:$4 sm:$0xff]   ;;  %v2342_v13 = vld [vmem:[#allocation4 + $0x24] ss:$16 sps:$4 sm:$0xff]  }
  0x31   :  { %366 = vmatprep.subr.bf16.mxu0 %v1898_v29  ;;  %439 = vmatprep.subr.bf16.mxu1 %v1901_v30  ;;  %v2344_v14 = vld [vmem:[#allocation4 + $0x2c] ss:$16 sps:$4 sm:$0xff]   ;;  %v2352_v15 = vld [vmem:[#allocation4 + $0x20] ss:$16 sps:$4 sm:$0xff]   ;;  %v2354_v16 = vld [vmem:[#allocation4 + $0x28] ss:$16 sps:$4 sm:$0xff]  }
  0x32   :  { %v2358_v17 = vld [vmem:[#allocation4 + $0x4] ss:$16 sps:$4 sm:$0xff]   ;;  %v2360_v18 = vld [vmem:[#allocation4 + $0xc] ss:$16 sps:$4 sm:$0xff]   ;;  %v2366_v19 = vld [vmem:[#allocation4] ss:$16 sps:$4 sm:$0xff]  }
  0x33   :  { %v2368_v20 = vld [vmem:[#allocation4 + $0x8] ss:$16 sps:$4 sm:$0xff]   ;;  %v153_v21 = vshrl.u32 %v60_v43, 7  ;;  %v150_v24 = vld [vmem:[%s2831_s3] sm:$0xf] }
  0x34   :  { %367 = vmatpush1.bf16.msra.mxu0 %v1900_v31  ;;  %440 = vmatpush1.bf16.msra.mxu1 %v1903_v32 }
  0x35   :  { %368 = vmatprep.subr.bf16.mxu0 %v1904_v33  ;;  %441 = vmatprep.subr.bf16.mxu1 %v1907_v34  ;;  %v154_v22 = vsub.s32 0, %v153_v21  ;;  %v162_v23 = vsub.s32 2, %v153_v21  ;;  %v158_v27 = vsub.s32 1, %v153_v21  ;;  %v166_v28 = vsub.s32 3, %v153_v21 }
  0x37   :  { %v155_v31 = vrot.slane %v150_v24, %v154_v22  ;;  %v2426_v32 = vrot.slane %v150_v24, %v162_v23 }
  0x38   :  { %369 = vmatpush1.bf16.msra.mxu0 %v1906_v35  ;;  %442 = vmatpush1.bf16.msra.mxu1 %v1909_v36  ;;  %v159_v35 = vrot.slane %v150_v24, %v158_v27  ;;  %v2428_v36 = vrot.slane %v150_v24, %v166_v28 }
  0x39   :  { %370 = vmatprep.subr.bf16.mxu0 %v1910_v37  ;;  %443 = vmatprep.subr.bf16.mxu1 %v1913_v38 }
  0x3c   :  { %371 = vmatpush1.bf16.msra.mxu0 %v1912_v39  ;;  %444 = vmatpush1.bf16.msra.mxu1 %v1915_v40 }
  0x3d   :  { %694 = vmatprep.subr.bf16.mxu0 %v2253_v41  ;;  %735 = vmatprep.subr.bf16.mxu1 %v2255_v42 }
  0x99   :  { %v64_v44 = vpop.permute.xlu0 %63  ;;  %v70_v47 = vpop.permute.xlu1 %69 }
  0x9a   :  { %vm86_vm1 = vcmp.eq.s32.totalorder %v2260_v45, %v64_v44  ;;  %vm88_vm3 = vcmp.eq.s32.totalorder %v2260_v45, %v70_v47 }
  0x9d   :  { %v67_v46 = vpop.permute.xlu0 %66  ;;  %v73_v57 = vpop.permute.xlu1 %72 }
  0x9e   :  { %vm87_vm0 = vcmp.eq.s32.totalorder %v2260_v45, %v67_v46  ;;  %vm89_vm4 = vcmp.eq.s32.totalorder %v2260_v45, %v73_v57 }
  0x9f   :  { %vm1813_vm2 = vmpackc.low %vm87_vm0, %vm86_vm1 }
  0xa0   :  { %1814 = vmatmul.mubr.msk.bf16.vlgmr.msra.gmra.mxu0 %vm1813_vm2, %v2181_v52  ;;  %1822 = vmatmul.mubr.msk.bf16.vlgmr.msra.gmra.mxu1 %vm1813_vm2, %v2181_v52  ;;  %vm1815_vm5 = vmpackc.low %vm89_vm4, %vm88_vm3 }
  0xa1   :  { %695 = vmatpush1.bf16.msra.mxu0 %v2263_v48  ;;  %736 = vmatpush1.bf16.msra.mxu1 %v2265_v49  ;;  %v79_v62 = vpop.permute.xlu1 %78  ;;  %v76_v63 = vpop.permute.xlu0 %75 }
  0xa2   :  { %696 = vmatprep.subr.bf16.mxu0 %v2268_v50  ;;  %737 = vmatprep.subr.bf16.mxu1 %v2270_v51  ;;  %vm91_vm6 = vcmp.eq.s32.totalorder %v2260_v45, %v79_v62  ;;  %vm90_vm7 = vcmp.eq.s32.totalorder %v2260_v45, %v76_v63 }
  0xa3   :  { %398 = vmatprep.mubr.bf16.mxu0 %v2835_v0  ;;  %471 = vmatprep.mubr.bf16.mxu1 %v2835_v0  ;;  %vm1817_vm8 = vmpackc.low %vm91_vm6, %vm90_vm7 }
  0xa5   :  { %697 = vmatpush1.bf16.msra.mxu0 %v2276_v53  ;;  %738 = vmatpush1.bf16.msra.mxu1 %v2278_v54  ;;  %v85_v9 = vpop.permute.xlu1 %84  ;;  %v82_v10 = vpop.permute.xlu0 %81 }
  0xa6   :  { %698 = vmatprep.subr.bf16.mxu0 %v2282_v55  ;;  %739 = vmatprep.subr.bf16.mxu1 %v2284_v56  ;;  %vm93_vm9 = vcmp.eq.s32.totalorder %v2260_v45, %v85_v9  ;;  %vm92_vm10 = vcmp.eq.s32.totalorder %v2260_v45, %v82_v10 }
  0xa7   :  { %vm1819_vm11 = vmpackc.low %vm93_vm9, %vm92_vm10 }
  0xa8   :  { %1816 = vmatmul.mubr.msk.bf16.gmra.mxu0 %vm1815_vm5, %v2181_v52  ;;  %1824 = vmatmul.mubr.msk.bf16.gmra.mxu1 %vm1815_vm5, %v2181_v52 }
  0xa9   :  { %699 = vmatpush1.bf16.msra.mxu0 %v2292_v58  ;;  %740 = vmatpush1.bf16.msra.mxu1 %v2294_v59 }
  0xaa   :  { %700 = vmatprep.subr.bf16.mxu0 %v2298_v60  ;;  %741 = vmatprep.subr.bf16.mxu1 %v2300_v61 }
  0xab   :  { %408 = vmatprep.mubr.bf16.mxu0 %v2835_v0  ;;  %481 = vmatprep.mubr.bf16.mxu1 %v2835_v0 }
  0xad   :  { %701 = vmatpush1.bf16.msra.mxu0 %v2306_v1  ;;  %742 = vmatpush1.bf16.msra.mxu1 %v2308_v2 }
  0xae   :  { %702 = vmatprep.subr.bf16.mxu0 %v2312_v3  ;;  %743 = vmatprep.subr.bf16.mxu1 %v2314_v4 }
  0xb0   :  { %1818 = vmatmul.mubr.msk.bf16.gmra.mxu0 %vm1817_vm8, %v2181_v52  ;;  %1826 = vmatmul.mubr.msk.bf16.gmra.mxu1 %vm1817_vm8, %v2181_v52 }
  0xb1   :  { %703 = vmatpush1.bf16.msra.mxu0 %v2322_v5  ;;  %744 = vmatpush1.bf16.msra.mxu1 %v2324_v6 }
  0xb2   :  { %704 = vmatprep.subr.bf16.mxu0 %v2328_v7  ;;  %745 = vmatprep.subr.bf16.mxu1 %v2330_v8 }
  0xb3   :  { %418 = vmatprep.mubr.bf16.mxu0 %v2835_v0  ;;  %491 = vmatprep.mubr.bf16.mxu1 %v2835_v0 }
  0xb5   :  { %705 = vmatpush1.bf16.msra.mxu0 %v2336_v11  ;;  %746 = vmatpush1.bf16.msra.mxu1 %v2338_v12 }
  0xb6   :  { %706 = vmatprep.subr.bf16.mxu0 %v2342_v13  ;;  %747 = vmatprep.subr.bf16.mxu1 %v2344_v14 }
  0xb8   :  { %1820 = vmatmul.mubr.msk.bf16.gmra.mxu0 %vm1819_vm11, %v2181_v52  ;;  %1828 = vmatmul.mubr.msk.bf16.gmra.mxu1 %vm1819_vm11, %v2181_v52 }
  0xb9   :  { %707 = vmatpush1.bf16.msra.mxu0 %v2352_v15  ;;  %748 = vmatpush1.bf16.msra.mxu1 %v2354_v16 }
  0xba   :  { %708 = vmatprep.subr.bf16.mxu0 %v2358_v17  ;;  %749 = vmatprep.subr.bf16.mxu1 %v2360_v18 }
  0xbb   :  { %726 = vmatprep.mubr.bf16.mxu0 %v2835_v0  ;;  %767 = vmatprep.mubr.bf16.mxu1 %v2835_v0 }
  0xbd   :  { %709 = vmatpush1.bf16.msra.mxu0 %v2366_v19  ;;  %750 = vmatpush1.bf16.msra.mxu1 %v2368_v20 }
  0xbe   :  { %805 = vmatprep.subr.bf16.mxu0 %v2253_v41  ;;  %846 = vmatprep.subr.bf16.mxu1 %v2255_v42 }
  0xc0   :  { %727 = vmatmul.mubr.bf16.vlgmr.msra.gmra.mxu0 %v2835_v0  ;;  %768 = vmatmul.mubr.bf16.vlgmr.msra.gmra.mxu1 %v2835_v0 }
  0xc1   :  { %806 = vmatpush1.bf16.msra.mxu0 %v2263_v48  ;;  %847 = vmatpush1.bf16.msra.mxu1 %v2265_v49 }
  0xc2   :  { %807 = vmatprep.subr.bf16.mxu0 %v2268_v50  ;;  %848 = vmatprep.subr.bf16.mxu1 %v2270_v51 }
  0xc3   :  { %837 = vmatprep.mubr.bf16.mxu0 %v2835_v0  ;;  %878 = vmatprep.mubr.bf16.mxu1 %v2835_v0 }
  0xc5   :  { %808 = vmatpush1.bf16.msra.mxu0 %v2276_v53  ;;  %849 = vmatpush1.bf16.msra.mxu1 %v2278_v54 }
  0xc6   :  { %809 = vmatprep.subr.bf16.mxu0 %v2282_v55  ;;  %850 = vmatprep.subr.bf16.mxu1 %v2284_v56 }
  0xc9   :  { %810 = vmatpush1.bf16.msra.mxu0 %v2292_v58  ;;  %851 = vmatpush1.bf16.msra.mxu1 %v2294_v59 }
  0xca   :  { %811 = vmatprep.subr.bf16.mxu0 %v2298_v60  ;;  %852 = vmatprep.subr.bf16.mxu1 %v2300_v61 }
  0xcd   :  { %812 = vmatpush1.bf16.msra.mxu0 %v2306_v1  ;;  %853 = vmatpush1.bf16.msra.mxu1 %v2308_v2 }
  0xce   :  { %813 = vmatprep.subr.bf16.mxu0 %v2312_v3  ;;  %854 = vmatprep.subr.bf16.mxu1 %v2314_v4 }
  0xd1   :  { %814 = vmatpush1.bf16.msra.mxu0 %v2322_v5  ;;  %855 = vmatpush1.bf16.msra.mxu1 %v2324_v6 }
  0xd2   :  { %815 = vmatprep.subr.bf16.mxu0 %v2328_v7  ;;  %856 = vmatprep.subr.bf16.mxu1 %v2330_v8 }
  0xd5   :  { %816 = vmatpush1.bf16.msra.mxu0 %v2336_v11  ;;  %857 = vmatpush1.bf16.msra.mxu1 %v2338_v12 }
  0xd6   :  { %817 = vmatprep.subr.bf16.mxu0 %v2342_v13  ;;  %858 = vmatprep.subr.bf16.mxu1 %v2344_v14 }
  0xd9   :  { %818 = vmatpush1.bf16.msra.mxu0 %v2352_v15  ;;  %859 = vmatpush1.bf16.msra.mxu1 %v2354_v16 }
  0xda   :  { %819 = vmatprep.subr.bf16.mxu0 %v2358_v17  ;;  %860 = vmatprep.subr.bf16.mxu1 %v2360_v18 }
  0xdd   :  { %820 = vmatpush1.bf16.msra.mxu0 %v2366_v19  ;;  %861 = vmatpush1.bf16.msra.mxu1 %v2368_v20 }
  0xde   :  { %916 = vmatprep.subr.bf16.mxu0 %v2253_v41  ;;  %957 = vmatprep.subr.bf16.mxu1 %v2255_v42 }
 0x160   :  { %v2418_v25 = vpop.f32.mrf.mxu0  ;;  %v2420_v26 = vpop.f32.mrf.mxu1 }
 0x162   :  { %v2422_v29 = vpop.f32.mrf.mxu0  ;;  %v2424_v30 = vpop.f32.mrf.mxu1 }
 0x164   :  { %v394_v33 = vpop.f32.mrf.mxu0  ;;  %v467_v34 = vpop.f32.mrf.mxu1 }
 0x165   :  { %v2430_v37 = vadd.f32 %v394_v33, %v155_v31  ;;  %v2433_v38 = vadd.f32 %v467_v34, %v2426_v32 }
 0x166   :  { %v396_v39 = vpop.f32.mrf.mxu0  ;;  %v469_v40 = vpop.f32.mrf.mxu1 }
 0x167   :  { %v2435_v43 = vadd.f32 %v396_v39, %v159_v35  ;;  %v2438_v44 = vadd.f32 %v469_v40, %v2428_v36 }
 0x168   :  { %v400_v45 = vpop.f32.mrf.mxu0  ;;  %v473_v46 = vpop.f32.mrf.mxu1 }
 0x169   :  { %v2440_v47 = vadd.f32 %v400_v45, %v155_v31  ;;  %v2443_v52 = vadd.f32 %v473_v46, %v2426_v32 }
 0x16a   :  { %v402_v57 = vpop.f32.mrf.mxu0  ;;  %v475_v62 = vpop.f32.mrf.mxu1 }
 0x16b   :  { %v2445_v63 = vadd.f32 %v402_v57, %v159_v35  ;;  %v2448_v9 = vadd.f32 %v475_v62, %v2428_v36 }
 0x16c   :  { %v404_v10 = vpop.f32.mrf.mxu0  ;;  %v477_v21 = vpop.f32.mrf.mxu1 }
 0x16d   :  { %2837 = vst [vmem:[#allocation8_spill] sm:$0xff] %v2448_v9  ;;  %v2450_v22 = vadd.f32 %v404_v10, %v155_v31  ;;  %v2453_v23 = vadd.f32 %v477_v21, %v2426_v32 }
 0x16e   :  { %v406_v24 = vpop.f32.mrf.mxu0  ;;  %v479_v27 = vpop.f32.mrf.mxu1 }
 0x16f   :  { %2838 = vst [vmem:[#allocation9_spill] sm:$0xff] %v2450_v22  ;;  %2839 = vst [vmem:[#allocation10_spill] sm:$0xff] %v2453_v23  ;;  %v2455_v28 = vadd.f32 %v406_v24, %v159_v35  ;;  %v2458_v33 = vadd.f32 %v479_v27, %v2428_v36 }
 0x170   :  { %v410_v34 = vpop.f32.mrf.mxu0  ;;  %v483_v39 = vpop.f32.mrf.mxu1 }
 0x171   :  { %2840 = vst [vmem:[#allocation11_spill] sm:$0xff] %v2455_v28  ;;  %2841 = vst [vmem:[#allocation12_spill] sm:$0xff] %v2458_v33  ;;  %v2460_v40 = vadd.f32 %v410_v34, %v155_v31  ;;  %v2463_v45 = vadd.f32 %v483_v39, %v2426_v32 }
 0x172   :  { %v412_v46 = vpop.f32.mrf.mxu0  ;;  %v485_v57 = vpop.f32.mrf.mxu1 }
 0x173   :  { %2842 = vst [vmem:[#allocation13_spill] sm:$0xff] %v2460_v40  ;;  %2843 = vst [vmem:[#allocation14_spill] sm:$0xff] %v2463_v45  ;;  %v2465_v62 = vadd.f32 %v412_v46, %v159_v35  ;;  %v2468_v10 = vadd.f32 %v485_v57, %v2428_v36 }
 0x174   :  { %v414_v21 = vpop.f32.mrf.mxu0  ;;  %v487_v24 = vpop.f32.mrf.mxu1 }
 0x175   :  { %2844 = vst [vmem:[#allocation15_spill] sm:$0xff] %v2465_v62  ;;  %2845 = vst [vmem:[#allocation16_spill] sm:$0xff] %v2468_v10  ;;  %v2470_v0 = vadd.f32 %v414_v21, %v155_v31  ;;  %v2473_v27 = vadd.f32 %v487_v24, %v2426_v32 }
 0x176   :  { %v416_v33 = vpop.f32.mrf.mxu0  ;;  %v489_v34 = vpop.f32.mrf.mxu1 }
 0x177   :  { %2846 = vst [vmem:[#allocation17_spill] sm:$0xff] %v2470_v0  ;;  %2847 = vst [vmem:[#allocation18_spill] sm:$0xff] %v2473_v27  ;;  %v2475_v40 = vadd.f32 %v416_v33, %v159_v35  ;;  %v2478_v39 = vadd.f32 %v489_v34, %v2428_v36 }
 0x178   :  { %v420_v45 = vpop.f32.mrf.mxu0  ;;  %v493_v46 = vpop.f32.mrf.mxu1 }
 0x179   :  { %2848 = vst [vmem:[#allocation19_spill] sm:$0xff] %v2475_v40  ;;  %2849 = vst [vmem:[#allocation20_spill] sm:$0xff] %v2478_v39  ;;  %v2480_v62 = vadd.f32 %v420_v45, %v155_v31  ;;  %v2483_v57 = vadd.f32 %v493_v46, %v2426_v32 }
 0x17a   :  { %v422_v10 = vpop.f32.mrf.mxu0  ;;  %v495_v21 = vpop.f32.mrf.mxu1 }
 0x17b   :  { %2850 = vst [vmem:[#allocation21_spill] sm:$0xff] %v2480_v62  ;;  %2851 = vst [vmem:[#allocation22_spill] sm:$0xff] %v2483_v57  ;;  %v2485_v0 = vadd.f32 %v422_v10, %v159_v35  ;;  %v2488_v24 = vadd.f32 %v495_v21, %v2428_v36  ;;  %v391_v62 = vadd.f32 %v2418_v25, %v155_v31 }
 0x17c   :  { %v424_v27 = vpop.f32.mrf.mxu0  ;;  %v497_v33 = vpop.f32.mrf.mxu1  ;;  %v393_v21 = vadd.f32 %v2422_v29, %v159_v35 }
 0x17d   :  { %2852 = vst [vmem:[#allocation23_spill] sm:$0xff] %v2485_v0  ;;  %2853 = vst [vmem:[#allocation24_spill] sm:$0xff] %v2488_v24  ;;  %v2490_v40 = vadd.f32 %v424_v27, %v155_v31  ;;  %v2493_v34 = vadd.f32 %v497_v33, %v2426_v32  ;;  %v464_v31 = vadd.f32 %v2420_v26, %v2426_v32 }
 0x17e   :  { %v426_v39 = vpop.f32.mrf.mxu0  ;;  %v499_v45 = vpop.f32.mrf.mxu1 }
 0x17f   :  { %2854 = vst [vmem:[#allocation25_spill] sm:$0xff] %v2490_v40  ;;  %2855 = vst [vmem:[#allocation26_spill] sm:$0xff] %v2493_v34  ;;  %v2496_v46 = vadd.f32 %v426_v39, %v159_v35  ;;  %v2499_v57 = vadd.f32 %v499_v45, %v2428_v36  ;;  %v466_v45 = vadd.f32 %v2424_v30, %v2428_v36 }
 0x180   :  { %v728_v10 = vpop.f32.mrf.mxu0  ;;  %v769_v0 = vpop.f32.mrf.mxu1 }
 0x181   :  { %v776_v24 = vadd.f32 %v728_v10, %v391_v62  ;;  %v778_v39 = vadd.f32 %v769_v0, %v464_v31 }
 0x182   :  { %v730_v23 = vpop.f32.mrf.mxu0  ;;  %v771_v27 = vpop.f32.mrf.mxu1 }
 0x183   :  { %v1776_v40 = vmul.f32 -1.442695, %v776_v24  ;;  %v777_v28 = vadd.f32 %v730_v23, %v393_v21  ;;  %v1778_v29 = vmul.f32 -1.442695, %v778_v39  ;;  %v779_v62 = vadd.f32 %v771_v27, %v466_v45 }
 0x184   :  { %v732_v33 = vpop.f32.mrf.mxu0  ;;  %v773_v34 = vpop.f32.mrf.mxu1 }
 0x185   :  { %1972 = vpow2.f32 %v1776_v40  ;;  %v1777_v22 = vmul.f32 -1.442695, %v777_v28  ;;  %v2856_v33 = vmov 0  }
 0x186   :  { %v733_v9 = vpop.f32.mrf.mxu0  ;;  %v774_v25 = vpop.f32.mrf.mxu1 }
 0x187   :  { %1974 = vpow2.f32 %v1777_v22 }
 0x188   :  { %1976 = vpow2.f32 %v1778_v29 }
 0x192   :  { %v1973_v35 = vpop.eup %1972 }
 0x193   :  { %v789_v10 = vadd.f32 1.0, %v1973_v35 }
 0x194   :  { %v1975_v24 = vpop.eup %1974 }
 0x195   :  { %1978 = vrcp.f32 %v789_v10  ;;  %v790_v23 = vadd.f32 1.0, %v1975_v24  ;;  %v1977_v9 = vpop.eup %1976 }
 0x196   :  { %1980 = vtanh.f32 %v779_v62  ;;  %v791_v34 = vadd.f32 1.0, %v1977_v9 }
 0x197   :  { %1982 = vrcp.f32 %v790_v23 }
 0x198   :  { %1984 = vrcp.f32 %v791_v34 }
 0x1a2   :  { %v1979_v28 = vpop.eup %1978 }
 0x1a3   :  { %v1981_v22 = vpop.eup %1980 }
 0x1a4   :  { %v1983_v40 = vpop.eup %1982  ;;  %v800_v0 = vmul.f32 %v1981_v22, %v1979_v28 }
 0x1a5   :  { %v799_v26 = vmul.f32 0.0, %v1983_v40  ;;  %v1985_v30 = vpop.eup %1984 }
 0x1a7   :  { %v2506_v32 = vadd.f32 %v800_v0, %v799_v26 }
 0x1a9   :  { %1986 = vtanh.f32 %v2506_v32 }
 0x1b6   :  { %v1987_v36 = vpop.eup %1986 }
 0x1b7   :  { %v803_v21 = vmul.f32 %v1987_v36, %v1985_v30 }
 0x1b9   :  { %v804_v27 = vpack.c.bf16 %v803_v21, %v803_v21 }
 0x1bb   :  { %838 = vmatmul.mubr.bf16.vlgmr.msra.gmra.mxu0 %v804_v27  ;;  %879 = vmatmul.mubr.bf16.vlgmr.msra.gmra.mxu1 %v804_v27 }
 0x1bc   :  { %917 = vmatpush1.bf16.msra.mxu0 %v2263_v48  ;;  %958 = vmatpush1.bf16.msra.mxu1 %v2265_v49 }
 0x1bd   :  { %918 = vmatprep.subr.bf16.mxu0 %v2268_v50  ;;  %959 = vmatprep.subr.bf16.mxu1 %v2270_v51 }
 0x1be   :  { %948 = vmatprep.mubr.bf16.mxu0 %v2856_v33  ;;  %989 = vmatprep.mubr.bf16.mxu1 %v2856_v33 }
 0x1c0   :  { %919 = vmatpush1.bf16.msra.mxu0 %v2276_v53  ;;  %960 = vmatpush1.bf16.msra.mxu1 %v2278_v54 }
 0x1c1   :  { %920 = vmatprep.subr.bf16.mxu0 %v2282_v55  ;;  %961 = vmatprep.subr.bf16.mxu1 %v2284_v56 }
 0x1c4   :  { %921 = vmatpush1.bf16.msra.mxu0 %v2292_v58  ;;  %962 = vmatpush1.bf16.msra.mxu1 %v2294_v59 }
 0x1c5   :  { %922 = vmatprep.subr.bf16.mxu0 %v2298_v60  ;;  %963 = vmatprep.subr.bf16.mxu1 %v2300_v61 }
 0x1c8   :  { %923 = vmatpush1.bf16.msra.mxu0 %v2306_v1  ;;  %964 = vmatpush1.bf16.msra.mxu1 %v2308_v2 }
 0x1c9   :  { %924 = vmatprep.subr.bf16.mxu0 %v2312_v3  ;;  %965 = vmatprep.subr.bf16.mxu1 %v2314_v4 }
 0x1cc   :  { %925 = vmatpush1.bf16.msra.mxu0 %v2322_v5  ;;  %966 = vmatpush1.bf16.msra.mxu1 %v2324_v6 }
 0x1cd   :  { %926 = vmatprep.subr.bf16.mxu0 %v2328_v7  ;;  %967 = vmatprep.subr.bf16.mxu1 %v2330_v8 }
 0x1d0   :  { %927 = vmatpush1.bf16.msra.mxu0 %v2336_v11  ;;  %968 = vmatpush1.bf16.msra.mxu1 %v2338_v12 }
 0x1d1   :  { %928 = vmatprep.subr.bf16.mxu0 %v2342_v13  ;;  %969 = vmatprep.subr.bf16.mxu1 %v2344_v14 }
 0x1d4   :  { %929 = vmatpush1.bf16.msra.mxu0 %v2352_v15  ;;  %970 = vmatpush1.bf16.msra.mxu1 %v2354_v16 }
 0x1d5   :  { %930 = vmatprep.subr.bf16.mxu0 %v2358_v17  ;;  %971 = vmatprep.subr.bf16.mxu1 %v2360_v18 }
 0x1d8   :  { %931 = vmatpush1.bf16.msra.mxu0 %v2366_v19  ;;  %972 = vmatpush1.bf16.msra.mxu1 %v2368_v20 }
 0x1d9   :  { %1027 = vmatprep.subr.bf16.mxu0 %v2253_v41  ;;  %1068 = vmatprep.subr.bf16.mxu1 %v2255_v42 }
 0x27b   :  { %v839_v25 = vpop.f32.mrf.mxu0  ;;  %v880_v31 = vpop.f32.mrf.mxu1 }
 0x27c   :  { %v887_v39 = vadd.f32 %v839_v25, %v2430_v37  ;;  %v889_v22 = vadd.f32 %v880_v31, %v2433_v38 }
 0x27d   :  { %v841_v45 = vpop.f32.mrf.mxu0  ;;  %v882_v29 = vpop.f32.mrf.mxu1 }
 0x27e   :  { %v1779_v35 = vmul.f32 -1.442695, %v887_v39  ;;  %v888_v62 = vadd.f32 %v841_v45, %v2435_v43  ;;  %v1781_v40 = vmul.f32 -1.442695, %v889_v22  ;;  %v890_v34 = vadd.f32 %v882_v29, %v2438_v44 }
 0x27f   :  { %v843_v10 = vpop.f32.mrf.mxu0  ;;  %v884_v24 = vpop.f32.mrf.mxu1 }
 0x280   :  { %1988 = vpow2.f32 %v1779_v35  ;;  %v1780_v23 = vmul.f32 -1.442695, %v888_v62 }
 0x281   :  { %v844_v9 = vpop.f32.mrf.mxu0  ;;  %v885_v28 = vpop.f32.mrf.mxu1 }
 0x282   :  { %1990 = vpow2.f32 %v1780_v23 }
 0x283   :  { %1992 = vpow2.f32 %v1781_v40 }
 0x284   :  { %1994 = vtanh.f32 %v890_v34 }
 0x28d   :  { %v1989_v26 = vpop.eup %1988 }
 0x28e   :  { %v900_v0 = vadd.f32 1.0, %v1989_v26 }
 0x28f   :  { %v1991_v37 = vpop.eup %1990 }
 0x290   :  { %1996 = vrcp.f32 %v900_v0  ;;  %v901_v30 = vadd.f32 1.0, %v1991_v37  ;;  %v1993_v43 = vpop.eup %1992 }
 0x291   :  { %v1995_v36 = vpop.eup %1994  ;;  %v902_v39 = vadd.f32 1.0, %v1993_v43  ;;  %v2857_v43 = vld [vmem:[#allocation8_spill] sm:$0xff] }
 0x292   :  { %1998 = vrcp.f32 %v901_v30 }
 0x293   :  { %2000 = vrcp.f32 %v902_v39 }
 0x29d   :  { %v1997_v21 = vpop.eup %1996 }
 0x29e   :  { %v911_v27 = vmul.f32 %v1997_v21, %v1995_v36 }
 0x29f   :  { %v1999_v25 = vpop.eup %1998 }
 0x2a0   :  { %v910_v45 = vmul.f32 %v1999_v25, %v2506_v32  ;;  %v2001_v44 = vpop.eup %2000 }
 0x2a2   :  { %v2548_v38 = vadd.f32 %v911_v27, %v910_v45 }
 0x2a4   :  { %2002 = vtanh.f32 %v2548_v38 }
 0x2b1   :  { %v2003_v31 = vpop.eup %2002 }
 0x2b2   :  { %v914_v29 = vmul.f32 %v2003_v31, %v2001_v44 }
 0x2b4   :  { %v915_v35 = vpack.c.bf16 %v914_v29, %v914_v29 }
 0x2b6   :  { %949 = vmatmul.mubr.bf16.vlgmr.msra.gmra.mxu0 %v915_v35  ;;  %990 = vmatmul.mubr.bf16.vlgmr.msra.gmra.mxu1 %v915_v35 }
 0x2b7   :  { %1028 = vmatpush1.bf16.msra.mxu0 %v2263_v48  ;;  %1069 = vmatpush1.bf16.msra.mxu1 %v2265_v49 }
 0x2b8   :  { %1029 = vmatprep.subr.bf16.mxu0 %v2268_v50  ;;  %1070 = vmatprep.subr.bf16.mxu1 %v2270_v51 }
 0x2b9   :  { %1059 = vmatprep.mubr.bf16.mxu0 %v2856_v33  ;;  %1100 = vmatprep.mubr.bf16.mxu1 %v2856_v33 }
 0x2bb   :  { %1030 = vmatpush1.bf16.msra.mxu0 %v2276_v53  ;;  %1071 = vmatpush1.bf16.msra.mxu1 %v2278_v54 }
 0x2bc   :  { %1031 = vmatprep.subr.bf16.mxu0 %v2282_v55  ;;  %1072 = vmatprep.subr.bf16.mxu1 %v2284_v56 }
 0x2bf   :  { %1032 = vmatpush1.bf16.msra.mxu0 %v2292_v58  ;;  %1073 = vmatpush1.bf16.msra.mxu1 %v2294_v59 }
 0x2c0   :  { %1033 = vmatprep.subr.bf16.mxu0 %v2298_v60  ;;  %1074 = vmatprep.subr.bf16.mxu1 %v2300_v61 }
 0x2c3   :  { %1034 = vmatpush1.bf16.msra.mxu0 %v2306_v1  ;;  %1075 = vmatpush1.bf16.msra.mxu1 %v2308_v2 }
 0x2c4   :  { %1035 = vmatprep.subr.bf16.mxu0 %v2312_v3  ;;  %1076 = vmatprep.subr.bf16.mxu1 %v2314_v4 }
 0x2c7   :  { %1036 = vmatpush1.bf16.msra.mxu0 %v2322_v5  ;;  %1077 = vmatpush1.bf16.msra.mxu1 %v2324_v6 }
 0x2c8   :  { %1037 = vmatprep.subr.bf16.mxu0 %v2328_v7  ;;  %1078 = vmatprep.subr.bf16.mxu1 %v2330_v8 }
 0x2cb   :  { %1038 = vmatpush1.bf16.msra.mxu0 %v2336_v11  ;;  %1079 = vmatpush1.bf16.msra.mxu1 %v2338_v12 }
 0x2cc   :  { %1039 = vmatprep.subr.bf16.mxu0 %v2342_v13  ;;  %1080 = vmatprep.subr.bf16.mxu1 %v2344_v14 }
 0x2cf   :  { %1040 = vmatpush1.bf16.msra.mxu0 %v2352_v15  ;;  %1081 = vmatpush1.bf16.msra.mxu1 %v2354_v16 }
 0x2d0   :  { %1041 = vmatprep.subr.bf16.mxu0 %v2358_v17  ;;  %1082 = vmatprep.subr.bf16.mxu1 %v2360_v18 }
 0x2d3   :  { %1042 = vmatpush1.bf16.msra.mxu0 %v2366_v19  ;;  %1083 = vmatpush1.bf16.msra.mxu1 %v2368_v20 }
 0x2d4   :  { %1138 = vmatprep.subr.bf16.mxu0 %v2253_v41  ;;  %1179 = vmatprep.subr.bf16.mxu1 %v2255_v42 }
 0x376   :  { %v950_v32 = vpop.f32.mrf.mxu0  ;;  %v991_v62 = vpop.f32.mrf.mxu1 }
 0x377   :  { %v998_v10 = vadd.f32 %v950_v32, %v2440_v47  ;;  %v1000_v37 = vadd.f32 %v991_v62, %v2443_v52 }
 0x378   :  { %v952_v24 = vpop.f32.mrf.mxu0  ;;  %v993_v23 = vpop.f32.mrf.mxu1 }
 0x379   :  { %v1782_v9 = vmul.f32 -1.442695, %v998_v10  ;;  %v999_v28 = vadd.f32 %v952_v24, %v2445_v63  ;;  %v1784_v30 = vmul.f32 -1.442695, %v1000_v37  ;;  %v1001_v36 = vadd.f32 %v993_v23, %v2857_v43 }
 0x37a   :  { %v954_v22 = vpop.f32.mrf.mxu0  ;;  %v995_v40 = vpop.f32.mrf.mxu1 }
 0x37b   :  { %2004 = vpow2.f32 %v1782_v9  ;;  %v1783_v34 = vmul.f32 -1.442695, %v999_v28  ;;  %v2858_v9 = vld [vmem:[#allocation9_spill] sm:$0xff] }
 0x37c   :  { %v955_v26 = vpop.f32.mrf.mxu0  ;;  %v996_v0 = vpop.f32.mrf.mxu1 }
 0x37d   :  { %2006 = vpow2.f32 %v1783_v34  ;;  %v2859_v26 = vld [vmem:[#allocation11_spill] sm:$0xff] }
 0x37e   :  { %2008 = vpow2.f32 %v1784_v30 }
 0x37f   :  { %2010 = vtanh.f32 %v1001_v36 }
 0x388   :  { %v2005_v21 = vpop.eup %2004 }
 0x389   :  { %v1011_v27 = vadd.f32 1.0, %v2005_v21 }
 0x38a   :  { %v2007_v47 = vpop.eup %2006 }
 0x38b   :  { %2012 = vrcp.f32 %v1011_v27  ;;  %v1012_v25 = vadd.f32 1.0, %v2007_v47  ;;  %v2009_v63 = vpop.eup %2008  ;;  %v2860_v27 = vld [vmem:[#allocation10_spill] sm:$0xff] }
 0x38c   :  { %v2011_v39 = vpop.eup %2010  ;;  %v1013_v29 = vadd.f32 1.0, %v2009_v63 }
 0x38d   :  { %2014 = vrcp.f32 %v1012_v25 }
 0x38e   :  { %2016 = vrcp.f32 %v1013_v29 }
 0x398   :  { %v2013_v45 = vpop.eup %2012 }
 0x399   :  { %v1022_v44 = vmul.f32 %v2013_v45, %v2011_v39 }
 0x39a   :  { %v2015_v31 = vpop.eup %2014 }
 0x39b   :  { %v1021_v35 = vmul.f32 %v2015_v31, %v2548_v38  ;;  %v2017_v32 = vpop.eup %2016 }
 0x39d   :  { %v2590_v52 = vadd.f32 %v1022_v44, %v1021_v35 }
 0x39f   :  { %2018 = vtanh.f32 %v2590_v52 }
 0x3ac   :  { %v2019_v62 = vpop.eup %2018 }
 0x3ad   :  { %v1025_v10 = vmul.f32 %v2019_v62, %v2017_v32 }
 0x3af   :  { %v1026_v24 = vpack.c.bf16 %v1025_v10, %v1025_v10 }
 0x3b1   :  { %1060 = vmatmul.mubr.bf16.vlgmr.msra.gmra.mxu0 %v1026_v24  ;;  %1101 = vmatmul.mubr.bf16.vlgmr.msra.gmra.mxu1 %v1026_v24 }
 0x3b2   :  { %1139 = vmatpush1.bf16.msra.mxu0 %v2263_v48  ;;  %1180 = vmatpush1.bf16.msra.mxu1 %v2265_v49 }
 0x3b3   :  { %1140 = vmatprep.subr.bf16.mxu0 %v2268_v50  ;;  %1181 = vmatprep.subr.bf16.mxu1 %v2270_v51 }
 0x3b4   :  { %1170 = vmatprep.mubr.bf16.mxu0 %v2856_v33  ;;  %1211 = vmatprep.mubr.bf16.mxu1 %v2856_v33 }
 0x3b6   :  { %1141 = vmatpush1.bf16.msra.mxu0 %v2276_v53  ;;  %1182 = vmatpush1.bf16.msra.mxu1 %v2278_v54 }
 0x3b7   :  { %1142 = vmatprep.subr.bf16.mxu0 %v2282_v55  ;;  %1183 = vmatprep.subr.bf16.mxu1 %v2284_v56 }
 0x3ba   :  { %1143 = vmatpush1.bf16.msra.mxu0 %v2292_v58  ;;  %1184 = vmatpush1.bf16.msra.mxu1 %v2294_v59 }
 0x3bb   :  { %1144 = vmatprep.subr.bf16.mxu0 %v2298_v60  ;;  %1185 = vmatprep.subr.bf16.mxu1 %v2300_v61 }
 0x3be   :  { %1145 = vmatpush1.bf16.msra.mxu0 %v2306_v1  ;;  %1186 = vmatpush1.bf16.msra.mxu1 %v2308_v2 }
 0x3bf   :  { %1146 = vmatprep.subr.bf16.mxu0 %v2312_v3  ;;  %1187 = vmatprep.subr.bf16.mxu1 %v2314_v4 }
 0x3c2   :  { %1147 = vmatpush1.bf16.msra.mxu0 %v2322_v5  ;;  %1188 = vmatpush1.bf16.msra.mxu1 %v2324_v6 }
 0x3c3   :  { %1148 = vmatprep.subr.bf16.mxu0 %v2328_v7  ;;  %1189 = vmatprep.subr.bf16.mxu1 %v2330_v8 }
 0x3c6   :  { %1149 = vmatpush1.bf16.msra.mxu0 %v2336_v11  ;;  %1190 = vmatpush1.bf16.msra.mxu1 %v2338_v12 }
 0x3c7   :  { %1150 = vmatprep.subr.bf16.mxu0 %v2342_v13  ;;  %1191 = vmatprep.subr.bf16.mxu1 %v2344_v14 }
 0x3ca   :  { %1151 = vmatpush1.bf16.msra.mxu0 %v2352_v15  ;;  %1192 = vmatpush1.bf16.msra.mxu1 %v2354_v16 }
 0x3cb   :  { %1152 = vmatprep.subr.bf16.mxu0 %v2358_v17  ;;  %1193 = vmatprep.subr.bf16.mxu1 %v2360_v18 }
 0x3ce   :  { %1153 = vmatpush1.bf16.msra.mxu0 %v2366_v19  ;;  %1194 = vmatpush1.bf16.msra.mxu1 %v2368_v20 }
 0x3cf   :  { %1249 = vmatprep.subr.bf16.mxu0 %v2253_v41  ;;  %1290 = vmatprep.subr.bf16.mxu1 %v2255_v42  ;;  %v2861_v42 = vld [vmem:[#allocation12_spill] sm:$0xff] }
 0x471   :  { %v1061_v38 = vpop.f32.mrf.mxu0  ;;  %v1102_v23 = vpop.f32.mrf.mxu1 }
 0x472   :  { %v1109_v28 = vadd.f32 %v1061_v38, %v2858_v9  ;;  %v1111_v41 = vadd.f32 %v1102_v23, %v2860_v27 }
 0x473   :  { %v1063_v22 = vpop.f32.mrf.mxu0  ;;  %v1104_v40 = vpop.f32.mrf.mxu1 }
 0x474   :  { %v1785_v34 = vmul.f32 -1.442695, %v1109_v28  ;;  %v1110_v0 = vadd.f32 %v1063_v22, %v2859_v26  ;;  %v1787_v47 = vmul.f32 -1.442695, %v1111_v41  ;;  %v1112_v25 = vadd.f32 %v1104_v40, %v2861_v42 }
 0x475   :  { %v1065_v37 = vpop.f32.mrf.mxu0  ;;  %v1106_v30 = vpop.f32.mrf.mxu1 }
 0x476   :  { %2020 = vpow2.f32 %v1785_v34  ;;  %v1786_v43 = vmul.f32 -1.442695, %v1110_v0 }
 0x477   :  { %v1066_v36 = vpop.f32.mrf.mxu0  ;;  %v1107_v21 = vpop.f32.mrf.mxu1 }
 0x478   :  { %2022 = vpow2.f32 %v1786_v43 }
 0x479   :  { %2024 = vpow2.f32 %v1787_v47 }
 0x47a   :  { %2026 = vtanh.f32 %v1112_v25 }
 0x483   :  { %v2021_v63 = vpop.eup %2020 }
 0x484   :  { %v1122_v39 = vadd.f32 1.0, %v2021_v63 }
 0x485   :  { %v2023_v45 = vpop.eup %2022 }
 0x486   :  { %2028 = vrcp.f32 %v1122_v39  ;;  %v1123_v44 = vadd.f32 1.0, %v2023_v45  ;;  %v2025_v31 = vpop.eup %2024  ;;  %v2681_v45 = vld [vmem:[#allocation4 + $0xe0] ss:$16 sps:$4 sm:$0xff]  }
 0x487   :  { %v2027_v29 = vpop.eup %2026  ;;  %v1124_v10 = vadd.f32 1.0, %v2025_v31  ;;  %v2687_v31 = vld [vmem:[#allocation4 + $0xc4] ss:$16 sps:$4 sm:$0xff]  }
 0x488   :  { %2030 = vrcp.f32 %v1123_v44  ;;  %v2684_v44 = vld [vmem:[#allocation4 + $0xe8] ss:$16 sps:$4 sm:$0xff]  }
 0x489   :  { %2032 = vrcp.f32 %v1124_v10  ;;  %v2704_v10 = vld [vmem:[#allocation4 + $0xac] ss:$16 sps:$4 sm:$0xff]  }
 0x493   :  { %v2029_v35 = vpop.eup %2028 }
 0x494   :  { %v1133_v32 = vmul.f32 %v2029_v35, %v2027_v29  ;;  %v2690_v29 = vld [vmem:[#allocation4 + $0xcc] ss:$16 sps:$4 sm:$0xff]   ;;  %v2695_v35 = vld [vmem:[#allocation4 + $0xc0] ss:$16 sps:$4 sm:$0xff]  }
 0x495   :  { %v2031_v62 = vpop.eup %2030 }
 0x496   :  { %v1132_v24 = vmul.f32 %v2031_v62, %v2590_v52  ;;  %v2033_v23 = vpop.eup %2032  ;;  %v2701_v62 = vld [vmem:[#allocation4 + $0xa4] ss:$16 sps:$4 sm:$0xff]  }
 0x498   :  { %v2632_v38 = vadd.f32 %v1133_v32, %v1132_v24  ;;  %v2698_v32 = vld [vmem:[#allocation4 + $0xc8] ss:$16 sps:$4 sm:$0xff]   ;;  %v2707_v24 = vld [vmem:[#allocation4 + $0xa0] ss:$16 sps:$4 sm:$0xff]  }
 0x49a   :  { %2034 = vtanh.f32 %v2632_v38 }
 0x4a7   :  { %v2035_v9 = vpop.eup %2034 }
 0x4a8   :  { %v1136_v28 = vmul.f32 %v2035_v9, %v2033_v23  ;;  %v2713_v23 = vld [vmem:[#allocation4 + $0x84] ss:$16 sps:$4 sm:$0xff]   ;;  %v2716_v9 = vld [vmem:[#allocation4 + $0x8c] ss:$16 sps:$4 sm:$0xff]  }
 0x4aa   :  { %v1137_v22 = vpack.c.bf16 %v1136_v28, %v1136_v28  ;;  %v2719_v28 = vld [vmem:[#allocation4 + $0x80] ss:$16 sps:$4 sm:$0xff]  }
 0x4ac   :  { %1171 = vmatmul.mubr.bf16.vlgmr.msra.gmra.mxu0 %v1137_v22  ;;  %1212 = vmatmul.mubr.bf16.vlgmr.msra.gmra.mxu1 %v1137_v22  ;;  %v2722_v22 = vld [vmem:[#allocation4 + $0x88] ss:$16 sps:$4 sm:$0xff]  }
 0x4ad   :  { %1250 = vmatpush1.bf16.msra.mxu0 %v2263_v48  ;;  %1291 = vmatpush1.bf16.msra.mxu1 %v2265_v49  ;;  %v2667_v48 = vld [vmem:[#allocation4 + $0xe4] ss:$16 sps:$4 sm:$0xff]   ;;  %v2670_v49 = vld [vmem:[#allocation4 + $0xec] ss:$16 sps:$4 sm:$0xff]  }
 0x4ae   :  { %1251 = vmatprep.subr.bf16.mxu0 %v2268_v50  ;;  %1292 = vmatprep.subr.bf16.mxu1 %v2270_v51 }
 0x4af   :  { %1281 = vmatprep.mubr.bf16.mxu0 %v2856_v33  ;;  %1322 = vmatprep.mubr.bf16.mxu1 %v2856_v33 }
 0x4b1   :  { %1252 = vmatpush1.bf16.msra.mxu0 %v2276_v53  ;;  %1293 = vmatpush1.bf16.msra.mxu1 %v2278_v54  ;;  %v2862_v53 = vld [vmem:[#allocation13_spill] sm:$0xff] }
 0x4b2   :  { %1253 = vmatprep.subr.bf16.mxu0 %v2282_v55  ;;  %1294 = vmatprep.subr.bf16.mxu1 %v2284_v56 }
 0x4b5   :  { %1254 = vmatpush1.bf16.msra.mxu0 %v2292_v58  ;;  %1295 = vmatpush1.bf16.msra.mxu1 %v2294_v59  ;;  %v2863_v59 = vld [vmem:[#allocation15_spill] sm:$0xff] }
 0x4b6   :  { %1255 = vmatprep.subr.bf16.mxu0 %v2298_v60  ;;  %1296 = vmatprep.subr.bf16.mxu1 %v2300_v61 }
 0x4b9   :  { %1256 = vmatpush1.bf16.msra.mxu0 %v2306_v1  ;;  %1297 = vmatpush1.bf16.msra.mxu1 %v2308_v2 }
 0x4ba   :  { %1257 = vmatprep.subr.bf16.mxu0 %v2312_v3  ;;  %1298 = vmatprep.subr.bf16.mxu1 %v2314_v4 }
 0x4bd   :  { %1258 = vmatpush1.bf16.msra.mxu0 %v2322_v5  ;;  %1299 = vmatpush1.bf16.msra.mxu1 %v2324_v6  ;;  %v2864_v5 = vld [vmem:[#allocation14_spill] sm:$0xff] }
 0x4be   :  { %1259 = vmatprep.subr.bf16.mxu0 %v2328_v7  ;;  %1300 = vmatprep.subr.bf16.mxu1 %v2330_v8  ;;  %v2865_v8 = vld [vmem:[#allocation16_spill] sm:$0xff] }
 0x4c1   :  { %1260 = vmatpush1.bf16.msra.mxu0 %v2336_v11  ;;  %1301 = vmatpush1.bf16.msra.mxu1 %v2338_v12 }
 0x4c2   :  { %1261 = vmatprep.subr.bf16.mxu0 %v2342_v13  ;;  %1302 = vmatprep.subr.bf16.mxu1 %v2344_v14 }
 0x4c5   :  { %1262 = vmatpush1.bf16.msra.mxu0 %v2352_v15  ;;  %1303 = vmatpush1.bf16.msra.mxu1 %v2354_v16 }
 0x4c6   :  { %1263 = vmatprep.subr.bf16.mxu0 %v2358_v17  ;;  %1304 = vmatprep.subr.bf16.mxu1 %v2360_v18 }
 0x4c9   :  { %1264 = vmatpush1.bf16.msra.mxu0 %v2366_v19  ;;  %1305 = vmatpush1.bf16.msra.mxu1 %v2368_v20 }
 0x4ca   :  { %1360 = vmatprep.subr.bf16.mxu0 %v2667_v48  ;;  %1401 = vmatprep.subr.bf16.mxu1 %v2670_v49 }
 0x56c   :  { %v1172_v50 = vpop.f32.mrf.mxu0  ;;  %v1213_v51 = vpop.f32.mrf.mxu1 }
 0x56d   :  { %v1220_v54 = vadd.f32 %v1172_v50, %v2862_v53  ;;  %v1222_v6 = vadd.f32 %v1213_v51, %v2864_v5  ;;  %v2725_v50 = vld [vmem:[#allocation4 + $0x64] ss:$16 sps:$4 sm:$0xff]   ;;  %v2728_v51 = vld [vmem:[#allocation4 + $0x6c] ss:$16 sps:$4 sm:$0xff]   ;;  %v2731_v53 = vld [vmem:[#allocation4 + $0x60] ss:$16 sps:$4 sm:$0xff]  }
 0x56e   :  { %v1174_v55 = vpop.f32.mrf.mxu0  ;;  %v1215_v56 = vpop.f32.mrf.mxu1 }
 0x56f   :  { %v1788_v58 = vmul.f32 -1.442695, %v1220_v54  ;;  %v1221_v60 = vadd.f32 %v1174_v55, %v2863_v59  ;;  %v1790_v7 = vmul.f32 -1.442695, %v1222_v6  ;;  %v1223_v52 = vadd.f32 %v1215_v56, %v2865_v8  ;;  %v2734_v54 = vld [vmem:[#allocation4 + $0x68] ss:$16 sps:$4 sm:$0xff]  }
 0x570   :  { %v1176_v61 = vpop.f32.mrf.mxu0  ;;  %v1217_v1 = vpop.f32.mrf.mxu1  ;;  %v2737_v55 = vld [vmem:[#allocation4 + $0x44] ss:$16 sps:$4 sm:$0xff]   ;;  %v2740_v56 = vld [vmem:[#allocation4 + $0x4c] ss:$16 sps:$4 sm:$0xff]  }
 0x571   :  { %2036 = vpow2.f32 %v1788_v58  ;;  %v1789_v2 = vmul.f32 -1.442695, %v1221_v60 }
 0x572   :  { %v1177_v3 = vpop.f32.mrf.mxu0  ;;  %v1218_v4 = vpop.f32.mrf.mxu1 }
 0x573   :  { %2038 = vpow2.f32 %v1789_v2 }
 0x574   :  { %2040 = vpow2.f32 %v1790_v7 }
 0x575   :  { %2042 = vtanh.f32 %v1223_v52 }
 0x57e   :  { %v2037_v40 = vpop.eup %2036 }
 0x57f   :  { %v1233_v34 = vadd.f32 1.0, %v2037_v40 }
 0x580   :  { %v2039_v26 = vpop.eup %2038 }
 0x581   :  { %2044 = vrcp.f32 %v1233_v34  ;;  %v1234_v0 = vadd.f32 1.0, %v2039_v26  ;;  %v2041_v37 = vpop.eup %2040 }
 0x582   :  { %v2043_v30 = vpop.eup %2042  ;;  %v1235_v27 = vadd.f32 1.0, %v2041_v37 }
 0x583   :  { %2046 = vrcp.f32 %v1234_v0 }
 0x584   :  { %2048 = vrcp.f32 %v1235_v27 }
 0x58e   :  { %v2045_v43 = vpop.eup %2044 }
 0x58f   :  { %v1244_v36 = vmul.f32 %v2045_v43, %v2043_v30 }
 0x590   :  { %v2047_v21 = vpop.eup %2046 }
 0x591   :  { %v1243_v41 = vmul.f32 %v2047_v21, %v2632_v38  ;;  %v2049_v42 = vpop.eup %2048  ;;  %v2710_v38 = vld [vmem:[#allocation4 + $0xa8] ss:$16 sps:$4 sm:$0xff]  }
 0x593   :  { %v2678_v47 = vadd.f32 %v1244_v36, %v1243_v41  ;;  %v2123_v41 = vld [vmem:[#allocation4 + $0x48] ss:$16 sps:$4 sm:$0xff]  }
 0x595   :  { %2050 = vtanh.f32 %v2678_v47 }
 0x5a2   :  { %v2051_v25 = vpop.eup %2050 }
 0x5a3   :  { %v1247_v63 = vmul.f32 %v2051_v25, %v2049_v42  ;;  %v2125_v42 = vld [vmem:[#allocation4 + $0x2c] ss:$16 sps:$4 sm:$0xff]   ;;  %v2126_v25 = vld [vmem:[#allocation4 + $0x20] ss:$16 sps:$4 sm:$0xff]  }
 0x5a5   :  { %v1248_v39 = vpack.c.bf16 %v1247_v63, %v1247_v63  ;;  %v2127_v63 = vld [vmem:[#allocation4 + $0x28] ss:$16 sps:$4 sm:$0xff]  }
 0x5a7   :  { %1282 = vmatmul.mubr.bf16.vlgmr.msra.gmra.mxu0 %v1248_v39  ;;  %1323 = vmatmul.mubr.bf16.vlgmr.msra.gmra.mxu1 %v1248_v39  ;;  %v2128_v39 = vld [vmem:[#allocation4 + $0x4] ss:$16 sps:$4 sm:$0xff]  }
 0x5a8   :  { %1361 = vmatpush1.bf16.msra.mxu0 %v2681_v45  ;;  %1402 = vmatpush1.bf16.msra.mxu1 %v2684_v44 }
 0x5a9   :  { %1362 = vmatprep.subr.bf16.mxu0 %v2687_v31  ;;  %1403 = vmatprep.subr.bf16.mxu1 %v2690_v29 }
 0x5aa   :  { %1392 = vmatprep.mubr.bf16.mxu0 %v2856_v33  ;;  %1433 = vmatprep.mubr.bf16.mxu1 %v2856_v33 }
 0x5ac   :  { %1363 = vmatpush1.bf16.msra.mxu0 %v2695_v35  ;;  %1404 = vmatpush1.bf16.msra.mxu1 %v2698_v32 }
 0x5ad   :  { %1364 = vmatprep.subr.bf16.mxu0 %v2701_v62  ;;  %1405 = vmatprep.subr.bf16.mxu1 %v2704_v10 }
 0x5b0   :  { %1365 = vmatpush1.bf16.msra.mxu0 %v2707_v24  ;;  %1406 = vmatpush1.bf16.msra.mxu1 %v2710_v38 }
 0x5b1   :  { %1366 = vmatprep.subr.bf16.mxu0 %v2713_v23  ;;  %1407 = vmatprep.subr.bf16.mxu1 %v2716_v9 }
 0x5b4   :  { %1367 = vmatpush1.bf16.msra.mxu0 %v2719_v28  ;;  %1408 = vmatpush1.bf16.msra.mxu1 %v2722_v22 }
 0x5b5   :  { %1368 = vmatprep.subr.bf16.mxu0 %v2725_v50  ;;  %1409 = vmatprep.subr.bf16.mxu1 %v2728_v51 }
 0x5b8   :  { %1369 = vmatpush1.bf16.msra.mxu0 %v2731_v53  ;;  %1410 = vmatpush1.bf16.msra.mxu1 %v2734_v54 }
 0x5b9   :  { %1370 = vmatprep.subr.bf16.mxu0 %v2737_v55  ;;  %1411 = vmatprep.subr.bf16.mxu1 %v2740_v56 }
 0x5bc   :  { %1371 = vmatpush1.bf16.msra.mxu0 %v2336_v11  ;;  %1412 = vmatpush1.bf16.msra.mxu1 %v2338_v12 }
 0x5bd   :  { %1372 = vmatprep.subr.bf16.mxu0 %v2342_v13  ;;  %1413 = vmatprep.subr.bf16.mxu1 %v2344_v14  ;;  %v2866_v13 = vld [vmem:[#allocation17_spill] sm:$0xff] }
 0x5c0   :  { %1373 = vmatpush1.bf16.msra.mxu0 %v2352_v15  ;;  %1414 = vmatpush1.bf16.msra.mxu1 %v2354_v16  ;;  %v2867_v16 = vld [vmem:[#allocation19_spill] sm:$0xff] }
 0x5c1   :  { %1374 = vmatprep.subr.bf16.mxu0 %v2358_v17  ;;  %1415 = vmatprep.subr.bf16.mxu1 %v2360_v18 }
 0x5c4   :  { %1375 = vmatpush1.bf16.msra.mxu0 %v2366_v19  ;;  %1416 = vmatpush1.bf16.msra.mxu1 %v2368_v20  ;;  %v2868_v20 = vld [vmem:[#allocation18_spill] sm:$0xff] }
 0x5c5   :  { %1471 = vmatprep.subr.bf16.mxu0 %v2667_v48  ;;  %1512 = vmatprep.subr.bf16.mxu1 %v2670_v49  ;;  %v2869_v49 = vld [vmem:[#allocation20_spill] sm:$0xff] }
 0x667   :  { %v1283_v11 = vpop.f32.mrf.mxu0  ;;  %v1324_v12 = vpop.f32.mrf.mxu1 }
 0x668   :  { %v1331_v14 = vadd.f32 %v1283_v11, %v2866_v13  ;;  %v1333_v48 = vadd.f32 %v1324_v12, %v2868_v20  ;;  %v2873_v11 = vld [vmem:[#allocation24_spill] sm:$0xff] }
 0x669   :  { %v1285_v58 = vpop.f32.mrf.mxu0  ;;  %v1326_v15 = vpop.f32.mrf.mxu1 }
 0x66a   :  { %v1791_v59 = vmul.f32 -1.442695, %v1331_v14  ;;  %v1332_v60 = vadd.f32 %v1285_v58, %v2867_v16  ;;  %v1793_v2 = vmul.f32 -1.442695, %v1333_v48  ;;  %v1334_v3 = vadd.f32 %v1326_v15, %v2869_v49 }
 0x66b   :  { %v1287_v17 = vpop.f32.mrf.mxu0  ;;  %v1328_v61 = vpop.f32.mrf.mxu1 }
 0x66c   :  { %2052 = vpow2.f32 %v1791_v59  ;;  %v1792_v18 = vmul.f32 -1.442695, %v1332_v60 }
 0x66d   :  { %v1288_v19 = vpop.f32.mrf.mxu0  ;;  %v1329_v1 = vpop.f32.mrf.mxu1 }
 0x66e   :  { %2054 = vpow2.f32 %v1792_v18 }
 0x66f   :  { %2056 = vpow2.f32 %v1793_v2 }
 0x670   :  { %2058 = vtanh.f32 %v1334_v3  ;;  %v1964_v3 = vld [vmem:[%s2832_s4 + $0x38] sm:$0xff]  }
 0x679   :  { %v2053_v4 = vpop.eup %2052 }
 0x67a   :  { %v1344_v5 = vadd.f32 1.0, %v2053_v4  ;;  %v2182_v4 = vmov 0.0  }
 0x67b   :  { %v2055_v6 = vpop.eup %2054 }
 0x67c   :  { %2060 = vrcp.f32 %v1344_v5  ;;  %v1345_v7 = vadd.f32 1.0, %v2055_v6  ;;  %v2057_v8 = vpop.eup %2056  ;;  %v1965_v5 = vld [vmem:[%s2832_s4 + $0x30] sm:$0xff]   ;;  %v1966_v6 = vld [vmem:[%s2832_s4 + $0x28] sm:$0xff]  }
 0x67d   :  { %v2059_v52 = vpop.eup %2058  ;;  %v1346_v0 = vadd.f32 1.0, %v2057_v8  ;;  %v1968_v8 = vld [vmem:[%s2832_s4 + $0x18] sm:$0xff]  }
 0x67e   :  { %2062 = vrcp.f32 %v1345_v7  ;;  %v1967_v7 = vld [vmem:[%s2832_s4 + $0x20] sm:$0xff]  }
 0x67f   :  { %2064 = vrcp.f32 %v1346_v0 }
 0x689   :  { %v2061_v40 = vpop.eup %2060 }
 0x68a   :  { %v1355_v34 = vmul.f32 %v2061_v40, %v2059_v52  ;;  %v1969_v52 = vld [vmem:[%s2832_s4 + $0x10] sm:$0xff]   ;;  %v1970_v40 = vld [vmem:[%s2832_s4 + $0x8] sm:$0xff]  }
 0x68b   :  { %v2063_v26 = vpop.eup %2062 }
 0x68c   :  { %v1354_v37 = vmul.f32 %v2063_v26, %v2678_v47  ;;  %v2065_v43 = vpop.eup %2064  ;;  %v2124_v47 = vld [vmem:[#allocation4 + $0x24] ss:$16 sps:$4 sm:$0xff]  }
 0x68e   :  { %v2760_v30 = vadd.f32 %v1355_v34, %v1354_v37  ;;  %v1971_v34 = vld [vmem:[%s2832_s4] sm:$0xff]   ;;  %v2874_v37 = vld [vmem:[#allocation25_spill] sm:$0xff] }
 0x690   :  { %2066 = vtanh.f32 %v2760_v30 }
 0x69d   :  { %v2067_v36 = vpop.eup %2066 }
 0x69e   :  { %v1358_v21 = vmul.f32 %v2067_v36, %v2065_v43 }
 0x6a0   :  { %v1359_v27 = vpack.c.bf16 %v1358_v21, %v1358_v21 }
 0x6a2   :  { %1393 = vmatmul.mubr.bf16.vlgmr.msra.gmra.mxu0 %v1359_v27  ;;  %1434 = vmatmul.mubr.bf16.vlgmr.msra.gmra.mxu1 %v1359_v27 }
 0x6a3   :  { %1472 = vmatpush1.bf16.msra.mxu0 %v2681_v45  ;;  %1513 = vmatpush1.bf16.msra.mxu1 %v2684_v44  ;;  %v2129_v45 = vld [vmem:[#allocation4 + $0xc] ss:$16 sps:$4 sm:$0xff]   ;;  %v2130_v44 = vld [vmem:[#allocation4] ss:$16 sps:$4 sm:$0xff]  }
 0x6a4   :  { %1473 = vmatprep.subr.bf16.mxu0 %v2687_v31  ;;  %1514 = vmatprep.subr.bf16.mxu1 %v2690_v29  ;;  %v2131_v31 = vld [vmem:[#allocation4 + $0x8] ss:$16 sps:$4 sm:$0xff]  }
 0x6a5   :  { %1503 = vmatprep.mubr.bf16.mxu0 %v2856_v33  ;;  %1544 = vmatprep.mubr.bf16.mxu1 %v2856_v33  ;;  %v2122_v33 = vld [vmem:[#allocation4 + $0x40] ss:$16 sps:$4 sm:$0xff]  }
 0x6a7   :  { %1474 = vmatpush1.bf16.msra.mxu0 %v2695_v35  ;;  %1515 = vmatpush1.bf16.msra.mxu1 %v2698_v32  ;;  %v2870_v32 = vld [vmem:[#allocation21_spill] sm:$0xff] }
 0x6a8   :  { %1475 = vmatprep.subr.bf16.mxu0 %v2701_v62  ;;  %1516 = vmatprep.subr.bf16.mxu1 %v2704_v10 }
 0x6ab   :  { %1476 = vmatpush1.bf16.msra.mxu0 %v2707_v24  ;;  %1517 = vmatpush1.bf16.msra.mxu1 %v2710_v38 }
 0x6ac   :  { %1477 = vmatprep.subr.bf16.mxu0 %v2713_v23  ;;  %1518 = vmatprep.subr.bf16.mxu1 %v2716_v9  ;;  %v2871_v23 = vld [vmem:[#allocation23_spill] sm:$0xff] }
 0x6af   :  { %1478 = vmatpush1.bf16.msra.mxu0 %v2719_v28  ;;  %1519 = vmatpush1.bf16.msra.mxu1 %v2722_v22 }
 0x6b0   :  { %1479 = vmatprep.subr.bf16.mxu0 %v2725_v50  ;;  %1520 = vmatprep.subr.bf16.mxu1 %v2728_v51 }
 0x6b3   :  { %1480 = vmatpush1.bf16.msra.mxu0 %v2731_v53  ;;  %1521 = vmatpush1.bf16.msra.mxu1 %v2734_v54  ;;  %v2872_v54 = vld [vmem:[#allocation22_spill] sm:$0xff] }
 0x6b4   :  { %1481 = vmatprep.subr.bf16.mxu0 %v2737_v55  ;;  %1522 = vmatprep.subr.bf16.mxu1 %v2740_v56 }
 0x6b7   :  { %1482 = vmatpush1.bf16.msra.mxu0 %v2122_v33  ;;  %1523 = vmatpush1.bf16.msra.mxu1 %v2123_v41 }
 0x6b8   :  { %1483 = vmatprep.subr.bf16.mxu0 %v2124_v47  ;;  %1524 = vmatprep.subr.bf16.mxu1 %v2125_v42 }
 0x6bb   :  { %1484 = vmatpush1.bf16.msra.mxu0 %v2126_v25  ;;  %1525 = vmatpush1.bf16.msra.mxu1 %v2127_v63  ;;  %v2875_v63 = vld [vmem:[#allocation26_spill] sm:$0xff] }
 0x6bc   :  { %1485 = vmatprep.subr.bf16.mxu0 %v2128_v39  ;;  %1526 = vmatprep.subr.bf16.mxu1 %v2129_v45 }
 0x6bf   :  { %1486 = vmatpush1.bf16.msra.mxu0 %v2130_v44  ;;  %1527 = vmatpush1.bf16.msra.mxu1 %v2131_v31 }
 0x6c0   :  { %1838 = vmatprep.subr.bf16.mxu0 %v2182_v4 }
 0x762   :  { %v1394_v29 = vpop.f32.mrf.mxu0  ;;  %v1435_v35 = vpop.f32.mrf.mxu1 }
 0x763   :  { %v1442_v62 = vadd.f32 %v1394_v29, %v2870_v32  ;;  %v1444_v55 = vadd.f32 %v1435_v35, %v2872_v54 }
 0x764   :  { %v1396_v10 = vpop.f32.mrf.mxu0  ;;  %v1437_v24 = vpop.f32.mrf.mxu1 }
 0x765   :  { %v1794_v38 = vmul.f32 -1.442695, %v1442_v62  ;;  %v1443_v9 = vadd.f32 %v1396_v10, %v2871_v23  ;;  %v1796_v56 = vmul.f32 -1.442695, %v1444_v55  ;;  %v1445_v12 = vadd.f32 %v1437_v24, %v2873_v11 }
 0x766   :  { %v1398_v28 = vpop.f32.mrf.mxu0  ;;  %v1439_v22 = vpop.f32.mrf.mxu1 }
 0x767   :  { %2068 = vpow2.f32 %v1794_v38  ;;  %v1795_v50 = vmul.f32 -1.442695, %v1443_v9 }
 0x768   :  { %v1399_v51 = vpop.f32.mrf.mxu0  ;;  %v1440_v53 = vpop.f32.mrf.mxu1 }
 0x769   :  { %2070 = vpow2.f32 %v1795_v50  ;;  %v1800_v53 = vld [vmem:[%s2833_s5] ss:$0 sm:$0xff] }
 0x76a   :  { %2072 = vpow2.f32 %v1796_v56 }
 0x76b   :  { %2074 = vtanh.f32 %v1445_v12 }
 0x774   :  { %v2069_v13 = vpop.eup %2068 }
 0x775   :  { %v1455_v14 = vadd.f32 1.0, %v2069_v13 }
 0x776   :  { %v2071_v58 = vpop.eup %2070 }
 0x777   :  { %2076 = vrcp.f32 %v1455_v14  ;;  %v1456_v15 = vadd.f32 1.0, %v2071_v58  ;;  %v2073_v59 = vpop.eup %2072 }
 0x778   :  { %v2075_v16 = vpop.eup %2074  ;;  %v1457_v18 = vadd.f32 1.0, %v2073_v59 }
 0x779   :  { %2078 = vrcp.f32 %v1456_v15 }
 0x77a   :  { %2080 = vrcp.f32 %v1457_v18 }
 0x784   :  { %v2077_v60 = vpop.eup %2076 }
 0x785   :  { %v1466_v17 = vmul.f32 %v2077_v60, %v2075_v16 }
 0x786   :  { %v2079_v61 = vpop.eup %2078 }
 0x787   :  { %v1465_v19 = vmul.f32 %v2079_v61, %v2760_v30  ;;  %v2081_v20 = vpop.eup %2080 }
 0x789   :  { %v2790_v1 = vadd.f32 %v1466_v17, %v1465_v19 }
 0x78b   :  { %2082 = vtanh.f32 %v2790_v1 }
 0x798   :  { %v2083_v48 = vpop.eup %2082 }
 0x799   :  { %v1469_v2 = vmul.f32 %v2083_v48, %v2081_v20 }
 0x79b   :  { %v1470_v49 = vpack.c.bf16 %v1469_v2, %v1469_v2 }
 0x79d   :  { %1504 = vmatmul.mubr.bf16.vlgmr.msra.gmra.mxu0 %v1470_v49  ;;  %1545 = vmatmul.mubr.bf16.vlgmr.msra.gmra.mxu1 %v1470_v49 }
 0x79e   :  { %1839 = vmatpush3.bf16.msra.mxu0 %v1964_v3  ;;  %1854 = vmatprep.mubr.msk.bf16.mxu0 %vm2183_vm12, %v2182_v4 }
 0x79f   :  { %1840 = vmatprep.subr.bf16.mxu0 %v2182_v4 }
 0x7a2   :  { %1841 = vmatpush3.bf16.msra.mxu0 %v1965_v5 }
 0x7a3   :  { %1842 = vmatprep.subr.bf16.mxu0 %v2182_v4 }
 0x7a6   :  { %1843 = vmatpush3.bf16.msra.mxu0 %v1966_v6 }
 0x7a7   :  { %1844 = vmatprep.subr.bf16.mxu0 %v2182_v4 }
 0x7aa   :  { %1845 = vmatpush3.bf16.msra.mxu0 %v1967_v7 }
 0x7ab   :  { %1846 = vmatprep.subr.bf16.mxu0 %v2182_v4 }
 0x7ae   :  { %1847 = vmatpush3.bf16.msra.mxu0 %v1968_v8 }
 0x7af   :  { %1848 = vmatprep.subr.bf16.mxu0 %v2182_v4 }
 0x7b2   :  { %1849 = vmatpush3.bf16.msra.mxu0 %v1969_v52 }
 0x7b3   :  { %1850 = vmatprep.subr.bf16.mxu0 %v2182_v4 }
 0x7b6   :  { %1851 = vmatpush3.bf16.msra.mxu0 %v1970_v40 }
 0x7b7   :  { %1852 = vmatprep.subr.bf16.mxu0 %v2182_v4 }
 0x7ba   :  { %1853 = vmatpush3.bf16.msra.mxu0 %v1971_v34 }
 0x85d   :  { %v1505_v26 = vpop.f32.mrf.mxu0  ;;  %v1546_v0 = vpop.f32.mrf.mxu1 }
 0x85e   :  { %v1553_v30 = vadd.f32 %v1505_v26, %v2874_v37  ;;  %v1555_v39 = vadd.f32 %v1546_v0, %v2875_v63 }
 0x85f   :  { %v1507_v43 = vpop.f32.mrf.mxu0  ;;  %v1548_v36 = vpop.f32.mrf.mxu1 }
 0x860   :  { %v1797_v21 = vmul.f32 -1.442695, %v1553_v30  ;;  %v1554_v27 = vadd.f32 %v1507_v43, %v2496_v46  ;;  %v1799_v45 = vmul.f32 -1.442695, %v1555_v39  ;;  %v1556_v44 = vadd.f32 %v1548_v36, %v2499_v57 }
 0x861   :  { %v1509_v33 = vpop.f32.mrf.mxu0  ;;  %v1550_v41 = vpop.f32.mrf.mxu1 }
 0x862   :  { %2084 = vpow2.f32 %v1797_v21  ;;  %v1798_v47 = vmul.f32 -1.442695, %v1554_v27 }
 0x863   :  { %v1510_v42 = vpop.f32.mrf.mxu0  ;;  %v1551_v25 = vpop.f32.mrf.mxu1 }
 0x864   :  { %2086 = vpow2.f32 %v1798_v47 }
 0x865   :  { %2088 = vpow2.f32 %v1799_v45 }
 0x866   :  { %2090 = vtanh.f32 %v1556_v44 }
 0x86f   :  { %v2085_v31 = vpop.eup %2084 }
 0x870   :  { %v1566_v29 = vadd.f32 1.0, %v2085_v31 }
 0x871   :  { %v2087_v35 = vpop.eup %2086 }
 0x872   :  { %2092 = vrcp.f32 %v1566_v29  ;;  %v1567_v32 = vadd.f32 1.0, %v2087_v35  ;;  %v2089_v46 = vpop.eup %2088 }
 0x873   :  { %v2091_v62 = vpop.eup %2090  ;;  %v1568_v23 = vadd.f32 1.0, %v2089_v46 }
 0x874   :  { %2094 = vrcp.f32 %v1567_v32 }
 0x875   :  { %2096 = vrcp.f32 %v1568_v23 }
 0x87f   :  { %v2093_v10 = vpop.eup %2092 }
 0x880   :  { %v1577_v24 = vmul.f32 %v2093_v10, %v2091_v62 }
 0x881   :  { %v2095_v38 = vpop.eup %2094 }
 0x882   :  { %v1576_v9 = vmul.f32 %v2095_v38, %v2790_v1  ;;  %v2097_v57 = vpop.eup %2096 }
 0x884   :  { %v1578_v28 = vadd.f32 %v1577_v24, %v1576_v9 }
 0x886   :  { %2098 = vtanh.f32 %v1578_v28 }
 0x893   :  { %v2099_v22 = vpop.eup %2098 }
 0x894   :  { %v1580_v50 = vmul.f32 %v2099_v22, %v2097_v57 }
 0x896   :  { %v1581_v51 = vpack.c.bf16 %v1580_v50, %v1580_v50 }
 0x898   :  { %1855 = vmatmul.mubr.bf16.vlgmr.msra.gmra.mxu0 %v1581_v51 }
 0x958   :  { %v1687_v54 = vpop.f32.mrf.mxu0 }
 0x959   :  { %v1688_v55 = vadd.f32 %v1800_v53, %v1687_v54 }
 0x95a   :  { %v1856_v56 = vpop.f32.mrf.mxu0 }
 0x95b   :  { %1693 = vst [vmem:[%s2834_s6] sm:$0xff] %v1688_v55 }
 0x95c   :  { %v1690_v11 = vpop.f32.mrf.mxu0 }
 0x95e   :  { %v1857_v12 = vpop.f32.mrf.mxu0 }
 0x95f   :  { %1698 = vsyncpa [#allocation3], 1 }
 0x960   :  { %1699 = vsyncpa [#allocation5], 1 }

</bundles_post_ra>
